<compile_context>
chip_gen: v7x
topology: tpu7x:2x2x1
jax: 0.10.0
libtpu: 0.0.40
codegen_flags: <defaults>
</compile_context>

<pallas_src>
import functools

import jax
import jax.numpy as jnp
from jax import lax
from jax.experimental import pallas as pl
from jax.experimental.pallas import tpu as pltpu


# ----------------------------------------------------------------------------
# Fused decoder-layer kernel (one grid step = one batch element)
# ----------------------------------------------------------------------------
def _decoder_layer_kernel(
    tgt_ref, src_ref, bias_ref,
    wqkv_s_ref, bqkv_s_ref, wo_s_ref, bo_s_ref, ln1g_ref, ln1b_ref,
    wq_c_ref, bq_c_ref, wkv_c_ref, bkv_c_ref, wo_c_ref, bo_c_ref,
    ln2g_ref, ln2b_ref,
    ffw1_ref, ffb1_ref, ffw2_ref, ffb2_ref, ln3g_ref, ln3b_ref,
    out_ref, *, num_heads, d_att, eps):

    x = tgt_ref[...].astype(jnp.float32)          # (Tt, D)
    src = src_ref[...].astype(jnp.float32)        # (Ts, D)
    tq, d_model = x.shape
    hd = num_heads * d_att
    scale = jnp.float32(1.0 / float(d_att) ** 0.5)

    # contract last dims of both operands, no batch dims (avoids explicit k.T)
    qk_dims = (((1,), (1,)), ((), ()))

    def layer_norm(v, g_ref, b_ref):
        mean = jnp.mean(v, axis=-1, keepdims=True)
        cent = v - mean
        var = jnp.mean(cent * cent, axis=-1, keepdims=True)
        return cent * lax.rsqrt(var + eps) * g_ref[...] + b_ref[...]

    def softmax(s):
        m = jnp.max(s, axis=-1, keepdims=True)
        p = jnp.exp(s - m)
        return p * pl.reciprocal(jnp.sum(p, axis=-1, keepdims=True), approx=True)

    # ---------------- 1) masked relative self-attention + residual + LN -----
    qkv = jnp.dot(x, wqkv_s_ref[...], preferred_element_type=jnp.float32)
    qkv = qkv + bqkv_s_ref[...]                   # (Tt, 3*H*dh)

    row = lax.broadcasted_iota(jnp.int32, (tq, tq), 0)
    col = lax.broadcasted_iota(jnp.int32, (tq, tq), 1)
    causal = col <= row

    wo_s = wo_s_ref[...]                          # (H*dh, D)
    sa = jnp.zeros((tq, d_model), jnp.float32)
    for h in range(num_heads):                    # static loop, all heads in-kernel
        qh = qkv[:, h * d_att:(h + 1) * d_att] * scale
        kh = qkv[:, hd + h * d_att: hd + (h + 1) * d_att]
        vh = qkv[:, 2 * hd + h * d_att: 2 * hd + (h + 1) * d_att]
        s = lax.dot_general(qh, kh, qk_dims, preferred_element_type=jnp.float32)
        s = s + bias_ref[h]                       # relative position bias
        s = jnp.where(causal, s, jnp.float32(-1e30))
        oh = jnp.dot(softmax(s), vh, preferred_element_type=jnp.float32)
        # fold head output straight into the output projection
        sa = sa + jnp.dot(oh, wo_s[h * d_att:(h + 1) * d_att, :],
                          preferred_element_type=jnp.float32)
    sa = sa + bo_s_ref[...]
    y = layer_norm(sa + x, ln1g_ref, ln1b_ref)

    # ---------------- 2) cross-attention (no mask, no bias) + residual + LN -
    q_c = jnp.dot(y, wq_c_ref[...], preferred_element_type=jnp.float32) + bq_c_ref[...]
    kv_c = jnp.dot(src, wkv_c_ref[...], preferred_element_type=jnp.float32) + bkv_c_ref[...]

    wo_c = wo_c_ref[...]
    ca = jnp.zeros((tq, d_model), jnp.float32)
    for h in range(num_heads):
        qh = q_c[:, h * d_att:(h + 1) * d_att] * scale
        kh = kv_c[:, h * d_att:(h + 1) * d_att]
        vh = kv_c[:, hd + h * d_att: hd + (h + 1) * d_att]
        s = lax.dot_general(qh, kh, qk_dims, preferred_element_type=jnp.float32)
        oh = jnp.dot(softmax(s), vh, preferred_element_type=jnp.float32)
        ca = ca + jnp.dot(oh, wo_c[h * d_att:(h + 1) * d_att, :],
                          preferred_element_type=jnp.float32)
    ca = ca + bo_c_ref[...]
    y = layer_norm(ca + y, ln2g_ref, ln2b_ref)

    # ---------------- 3) feed-forward (Linear -> ReLU -> Linear) + res + LN -
    hmid = jnp.dot(y, ffw1_ref[...], preferred_element_type=jnp.float32) + ffb1_ref[...]
    hmid = jnp.maximum(hmid, 0.0)
    ff = jnp.dot(hmid, ffw2_ref[...], preferred_element_type=jnp.float32) + ffb2_ref[...]
    out_ref[...] = layer_norm(ff + y, ln3g_ref, ln3b_ref).astype(out_ref.dtype)


# ----------------------------------------------------------------------------
# Wrapper: one pallas_call for the whole layer, grid over batch (parallel)
# ----------------------------------------------------------------------------
def decoder_layer(target, source, params, num_heads, d_att, max_len, eps=1e-5):
    bsz, tt, d_model = target.shape
    ts = source.shape[1]
    hd = num_heads * d_att
    ff_width = params["ff_w1"].shape[1]

    # relative position bias: bias[h, i, j] = table[h, clip(i-j+max_len-1)]
    # (gather is host/XLA-side; everything else lives in the fused kernel)
    rel_idx = jnp.clip(jnp.arange(tt)[:, None] - jnp.arange(tt)[None, :] + (max_len - 1),
                       0, 2 * max_len - 2)
    rel_bias = params["rel_table"][:, rel_idx]                 # (H, Tt, Tt)

    kernel = functools.partial(_decoder_layer_kernel,
                               num_heads=num_heads, d_att=d_att, eps=eps)

    def full2d(shape):
        return pl.BlockSpec(shape, lambda i: (0, 0))

    return pl.pallas_call(
        kernel,
        out_shape=jax.ShapeDtypeStruct((bsz, tt, d_model), jnp.float32),
        grid=(bsz,),
        in_specs=[
            pl.BlockSpec((None, tt, d_model), lambda i: (i, 0, 0)),      # target
            pl.BlockSpec((None, ts, d_model), lambda i: (i, 0, 0)),      # source
            pl.BlockSpec((num_heads, tt, tt), lambda i: (0, 0, 0)),      # rel bias
            full2d((d_model, 3 * hd)), full2d((1, 3 * hd)),              # self QKV
            full2d((hd, d_model)), full2d((1, d_model)),                 # self out-proj
            full2d((1, d_model)), full2d((1, d_model)),                  # LN1
            full2d((d_model, hd)), full2d((1, hd)),                      # cross Q
            full2d((d_model, 2 * hd)), full2d((1, 2 * hd)),              # cross KV
            full2d((hd, d_model)), full2d((1, d_model)),                 # cross out-proj
            full2d((1, d_model)), full2d((1, d_model)),                  # LN2
            full2d((d_model, ff_width)), full2d((1, ff_width)),          # FF 1
            full2d((ff_width, d_model)), full2d((1, d_model)),           # FF 2
            full2d((1, d_model)), full2d((1, d_model)),                  # LN3
        ],
        out_specs=pl.BlockSpec((None, tt, d_model), lambda i: (i, 0, 0)),
        compiler_params=pltpu.CompilerParams(
            dimension_semantics=("parallel",)),
    )(target, source, rel_bias,
      params["wqkv_self"], params["bqkv_self"],
      params["wo_self"], params["bo_self"],
      params["ln1_g"], params["ln1_b"],
      params["wq_cross"], params["bq_cross"],
      params["wkv_cross"], params["bkv_cross"],
      params["wo_cross"], params["bo_cross"],
      params["ln2_g"], params["ln2_b"],
      params["ff_w1"], params["ff_b1"],
      params["ff_w2"], params["ff_b2"],
      params["ln3_g"], params["ln3_b"])


# ----------------------------------------------------------------------------
# Deterministic parameter construction (fused QKV / KV weights)
# ----------------------------------------------------------------------------
def init_params(key, d_model, d_att, num_heads, ff_width, max_len):
    hd = num_heads * d_att
    keys = jax.random.split(key, 8)

    def w(k, shape, fan_in):
        return (jax.random.normal(k, shape, jnp.float32) /
                jnp.sqrt(jnp.float32(fan_in))).astype(jnp.float32)

    params = {
        # self-attention: fused QKV weight, output projection, rel-pos table
        "wqkv_self": w(keys[0], (d_model, 3 * hd), d_model),
        "bqkv_self": jnp.zeros((1, 3 * hd), jnp.float32),
        "wo_self": w(keys[1], (hd, d_model), hd),
        "bo_self": jnp.zeros((1, d_model), jnp.float32),
        "rel_table": 0.02 * jax.random.normal(keys[2], (num_heads, 2 * max_len - 1),
                                              jnp.float32),
        "ln1_g": jnp.ones((1, d_model), jnp.float32),
        "ln1_b": jnp.zeros((1, d_model), jnp.float32),
        # cross-attention: Q weight + fused KV weight + output projection
        "wq_cross": w(keys[3], (d_model, hd), d_model),
        "bq_cross": jnp.zeros((1, hd), jnp.float32),
        "wkv_cross": w(keys[4], (d_model, 2 * hd), d_model),
        "bkv_cross": jnp.zeros((1, 2 * hd), jnp.float32),
        "wo_cross": w(keys[5], (hd, d_model), hd),
        "bo_cross": jnp.zeros((1, d_model), jnp.float32),
        "ln2_g": jnp.ones((1, d_model), jnp.float32),
        "ln2_b": jnp.zeros((1, d_model), jnp.float32),
        # feed-forward
        "ff_w1": w(keys[6], (d_model, ff_width), d_model),
        "ff_b1": jnp.zeros((1, ff_width), jnp.float32),
        "ff_w2": w(keys[7], (ff_width, d_model), ff_width),
        "ff_b2": jnp.zeros((1, d_model), jnp.float32),
        "ln3_g": jnp.ones((1, d_model), jnp.float32),
        "ln3_b": jnp.zeros((1, d_model), jnp.float32),
    }
    return params


if __name__ == "__main__":
    B, T_TGT, T_SRC = 2, 8, 8
    D_MODEL, D_ATT, NUM_HEADS = 32, 8, 4
    FF_WIDTH, TARGET_LEN = 32, 64

    key = jax.random.PRNGKey(0)
    k_t, k_s, k_p = jax.random.split(key, 3)
    target = jax.random.normal(k_t, (B, T_TGT, D_MODEL), jnp.float32)
    source = jax.random.normal(k_s, (B, T_SRC, D_MODEL), jnp.float32)
    params = init_params(k_p, D_MODEL, D_ATT, NUM_HEADS, FF_WIDTH, TARGET_LEN)

    out = decoder_layer(target, source, params, NUM_HEADS, D_ATT, TARGET_LEN)
    out = jax.block_until_ready(out)
    assert out.shape == (B, T_TGT, D_MODEL)
    assert bool(jnp.all(jnp.isfinite(out)))
    print("KERNEL_OK")
</pallas_src>

<mosaic_0001>
module attributes {stable_mosaic.version = 11 : i64} {
  func.func @_decoder_layer_kernel(%arg0: i32, %arg1: memref<1x8x32xf32, #tpu.memory_space<vmem>>, %arg2: memref<1x8x32xf32, #tpu.memory_space<vmem>>, %arg3: memref<4x8x8xf32, #tpu.memory_space<vmem>>, %arg4: memref<32x96xf32, #tpu.memory_space<vmem>>, %arg5: memref<1x96xf32, #tpu.memory_space<vmem>>, %arg6: memref<32x32xf32, #tpu.memory_space<vmem>>, %arg7: memref<1x32xf32, #tpu.memory_space<vmem>>, %arg8: memref<1x32xf32, #tpu.memory_space<vmem>>, %arg9: memref<1x32xf32, #tpu.memory_space<vmem>>, %arg10: memref<32x32xf32, #tpu.memory_space<vmem>>, %arg11: memref<1x32xf32, #tpu.memory_space<vmem>>, %arg12: memref<32x64xf32, #tpu.memory_space<vmem>>, %arg13: memref<1x64xf32, #tpu.memory_space<vmem>>, %arg14: memref<32x32xf32, #tpu.memory_space<vmem>>, %arg15: memref<1x32xf32, #tpu.memory_space<vmem>>, %arg16: memref<1x32xf32, #tpu.memory_space<vmem>>, %arg17: memref<1x32xf32, #tpu.memory_space<vmem>>, %arg18: memref<32x32xf32, #tpu.memory_space<vmem>>, %arg19: memref<1x32xf32, #tpu.memory_space<vmem>>, %arg20: memref<32x32xf32, #tpu.memory_space<vmem>>, %arg21: memref<1x32xf32, #tpu.memory_space<vmem>>, %arg22: memref<1x32xf32, #tpu.memory_space<vmem>>, %arg23: memref<1x32xf32, #tpu.memory_space<vmem>>, %arg24: memref<1x8x32xf32, #tpu.memory_space<vmem>>) attributes {dimension_semantics = [#tpu.dimension_semantics<parallel>], iteration_bounds = array<i64: 2>, scalar_prefetch = 0 : i64, scratch_operands = 0 : i64, tpu.core_type = #tpu.core_type<tc>, window_params = [{transform_indices = @transform_0, window_bounds = array<i64: 1, 8, 32>}, {transform_indices = @transform_1, window_bounds = array<i64: 1, 8, 32>}, {pipeline_mode = #tpu.pipeline_mode<synchronous>, transform_indices = @transform_2, window_bounds = array<i64: 4, 8, 8>}, {pipeline_mode = #tpu.pipeline_mode<synchronous>, transform_indices = @transform_3, window_bounds = array<i64: 32, 96>}, {pipeline_mode = #tpu.pipeline_mode<synchronous>, transform_indices = @transform_4, window_bounds = array<i64: 1, 96>}, {pipeline_mode = #tpu.pipeline_mode<synchronous>, transform_indices = @transform_5, window_bounds = array<i64: 32, 32>}, {pipeline_mode = #tpu.pipeline_mode<synchronous>, transform_indices = @transform_6, window_bounds = array<i64: 1, 32>}, {pipeline_mode = #tpu.pipeline_mode<synchronous>, transform_indices = @transform_7, window_bounds = array<i64: 1, 32>}, {pipeline_mode = #tpu.pipeline_mode<synchronous>, transform_indices = @transform_8, window_bounds = array<i64: 1, 32>}, {pipeline_mode = #tpu.pipeline_mode<synchronous>, transform_indices = @transform_9, window_bounds = array<i64: 32, 32>}, {pipeline_mode = #tpu.pipeline_mode<synchronous>, transform_indices = @transform_10, window_bounds = array<i64: 1, 32>}, {pipeline_mode = #tpu.pipeline_mode<synchronous>, transform_indices = @transform_11, window_bounds = array<i64: 32, 64>}, {pipeline_mode = #tpu.pipeline_mode<synchronous>, transform_indices = @transform_12, window_bounds = array<i64: 1, 64>}, {pipeline_mode = #tpu.pipeline_mode<synchronous>, transform_indices = @transform_13, window_bounds = array<i64: 32, 32>}, {pipeline_mode = #tpu.pipeline_mode<synchronous>, transform_indices = @transform_14, window_bounds = array<i64: 1, 32>}, {pipeline_mode = #tpu.pipeline_mode<synchronous>, transform_indices = @transform_15, window_bounds = array<i64: 1, 32>}, {pipeline_mode = #tpu.pipeline_mode<synchronous>, transform_indices = @transform_16, window_bounds = array<i64: 1, 32>}, {pipeline_mode = #tpu.pipeline_mode<synchronous>, transform_indices = @transform_17, window_bounds = array<i64: 32, 32>}, {pipeline_mode = #tpu.pipeline_mode<synchronous>, transform_indices = @transform_18, window_bounds = array<i64: 1, 32>}, {pipeline_mode = #tpu.pipeline_mode<synchronous>, transform_indices = @transform_19, window_bounds = array<i64: 32, 32>}, {pipeline_mode = #tpu.pipeline_mode<synchronous>, transform_indices = @transform_20, window_bounds = array<i64: 1, 32>}, {pipeline_mode = #tpu.pipeline_mode<synchronous>, transform_indices = @transform_21, window_bounds = array<i64: 1, 32>}, {pipeline_mode = #tpu.pipeline_mode<synchronous>, transform_indices = @transform_22, window_bounds = array<i64: 1, 32>}, {transform_indices = @transform_23, window_bounds = array<i64: 1, 8, 32>}]} {
    %c0 = arith.constant 0 : index
    %c0_0 = arith.constant 0 : index
    %c0_1 = arith.constant 0 : index
    %0 = vector.load %arg1[%c0, %c0_0, %c0_1] : memref<1x8x32xf32, #tpu.memory_space<vmem>>, vector<1x8x32xf32>
    %1 = vector.shape_cast %0 : vector<1x8x32xf32> to vector<8x32xf32>
    %c0_2 = arith.constant 0 : index
    %c0_3 = arith.constant 0 : index
    %c0_4 = arith.constant 0 : index
    %2 = vector.load %arg2[%c0_2, %c0_3, %c0_4] : memref<1x8x32xf32, #tpu.memory_space<vmem>>, vector<1x8x32xf32>
    %3 = vector.shape_cast %2 : vector<1x8x32xf32> to vector<8x32xf32>
    %c0_5 = arith.constant 0 : index
    %c0_6 = arith.constant 0 : index
    %4 = vector.load %arg4[%c0_5, %c0_6] : memref<32x96xf32, #tpu.memory_space<vmem>>, vector<32x96xf32>
    %cst = arith.constant dense<0.000000e+00> : vector<8x96xf32>
    %5 = tpu.matmul %1, %4, %cst {dimension_numbers = #tpu.dot_dimension_numbers<[1], [0], [0], [1], [0, 0, 1, 1], [], []>} : vector<8x32xf32>, vector<32x96xf32>, vector<8x96xf32> -> vector<8x96xf32>
    %c0_7 = arith.constant 0 : index
    %c0_8 = arith.constant 0 : index
    %6 = vector.load %arg5[%c0_7, %c0_8] : memref<1x96xf32, #tpu.memory_space<vmem>>, vector<1x96xf32>
    %7 = vector.broadcast %6 : vector<1x96xf32> to vector<8x96xf32>
    %8 = arith.addf %5, %7 : vector<8x96xf32>
    %9 = tpu.iota {dimensions = array<i32: 0>} : vector<8x8xi32>
    %10 = tpu.iota {dimensions = array<i32: 1>} : vector<8x8xi32>
    %11 = arith.cmpi sle, %10, %9 : vector<8x8xi32>
    %c0_9 = arith.constant 0 : index
    %c0_10 = arith.constant 0 : index
    %12 = vector.load %arg6[%c0_9, %c0_10] : memref<32x32xf32, #tpu.memory_space<vmem>>, vector<32x32xf32>
    %cst_11 = arith.constant 0.000000e+00 : f32
    %13 = vector.broadcast %cst_11 : f32 to vector<8x32xf32>
    %14 = vector.extract_strided_slice %8 {offsets = [0, 0], sizes = [8, 8], strides = [1, 1]} : vector<8x96xf32> to vector<8x8xf32>
    %cst_12 = arith.constant 0.353553385 : f32
    %15 = vector.broadcast %cst_12 : f32 to vector<8x8xf32>
    %16 = arith.mulf %14, %15 : vector<8x8xf32>
    %17 = vector.extract_strided_slice %8 {offsets = [0, 32], sizes = [8, 8], strides = [1, 1]} : vector<8x96xf32> to vector<8x8xf32>
    %18 = vector.extract_strided_slice %8 {offsets = [0, 64], sizes = [8, 8], strides = [1, 1]} : vector<8x96xf32> to vector<8x8xf32>
    %cst_13 = arith.constant dense<0.000000e+00> : vector<8x8xf32>
    %19 = tpu.matmul %16, %17, %cst_13 {dimension_numbers = #tpu.dot_dimension_numbers<[1], [1], [0], [0], [0, 0, 1, 0], [], []>} : vector<8x8xf32>, vector<8x8xf32>, vector<8x8xf32> -> vector<8x8xf32>
    %c0_14 = arith.constant 0 : index
    %c0_15 = arith.constant 0 : index
    %c0_16 = arith.constant 0 : index
    %20 = vector.load %arg3[%c0_14, %c0_15, %c0_16] : memref<4x8x8xf32, #tpu.memory_space<vmem>>, vector<1x8x8xf32>
    %21 = vector.shape_cast %20 : vector<1x8x8xf32> to vector<8x8xf32>
    %22 = arith.addf %19, %21 : vector<8x8xf32>
    %cst_17 = arith.constant -1.000000e+30 : f32
    %23 = vector.broadcast %cst_17 : f32 to vector<8x8xf32>
    %24 = arith.select %11, %22, %23 : vector<8x8xi1>, vector<8x8xf32>
    %cst_18 = arith.constant dense<0xFF800000> : vector<8xf32>
    %25 = vector.multi_reduction <maximumf>, %24, %cst_18 [1] : vector<8x8xf32> to vector<8xf32>
    %26 = vector.shape_cast %25 : vector<8xf32> to vector<8x1xf32>
    %27 = vector.broadcast %26 : vector<8x1xf32> to vector<8x8xf32>
    %28 = arith.subf %24, %27 : vector<8x8xf32>
    %29 = math.exp %28 : vector<8x8xf32>
    %cst_19 = arith.constant dense<0.000000e+00> : vector<8xf32>
    %30 = vector.multi_reduction <add>, %29, %cst_19 [1] : vector<8x8xf32> to vector<8xf32>
    %31 = vector.shape_cast %30 : vector<8xf32> to vector<8x1xf32>
    %32 = tpu.reciprocal %31 {approx = true} : vector<8x1xf32> -> vector<8x1xf32>
    %33 = vector.broadcast %32 : vector<8x1xf32> to vector<8x8xf32>
    %34 = arith.mulf %29, %33 : vector<8x8xf32>
    %cst_20 = arith.constant dense<0.000000e+00> : vector<8x8xf32>
    %35 = tpu.matmul %34, %18, %cst_20 {dimension_numbers = #tpu.dot_dimension_numbers<[1], [0], [0], [1], [0, 0, 1, 1], [], []>} : vector<8x8xf32>, vector<8x8xf32>, vector<8x8xf32> -> vector<8x8xf32>
    %36 = vector.extract_strided_slice %12 {offsets = [0, 0], sizes = [8, 32], strides = [1, 1]} : vector<32x32xf32> to vector<8x32xf32>
    %cst_21 = arith.constant dense<0.000000e+00> : vector<8x32xf32>
    %37 = tpu.matmul %35, %36, %cst_21 {dimension_numbers = #tpu.dot_dimension_numbers<[1], [0], [0], [1], [0, 0, 1, 1], [], []>} : vector<8x8xf32>, vector<8x32xf32>, vector<8x32xf32> -> vector<8x32xf32>
    %38 = arith.addf %13, %37 : vector<8x32xf32>
    %39 = vector.extract_strided_slice %8 {offsets = [0, 8], sizes = [8, 8], strides = [1, 1]} : vector<8x96xf32> to vector<8x8xf32>
    %cst_22 = arith.constant 0.353553385 : f32
    %40 = vector.broadcast %cst_22 : f32 to vector<8x8xf32>
    %41 = arith.mulf %39, %40 : vector<8x8xf32>
    %42 = vector.extract_strided_slice %8 {offsets = [0, 40], sizes = [8, 8], strides = [1, 1]} : vector<8x96xf32> to vector<8x8xf32>
    %43 = vector.extract_strided_slice %8 {offsets = [0, 72], sizes = [8, 8], strides = [1, 1]} : vector<8x96xf32> to vector<8x8xf32>
    %cst_23 = arith.constant dense<0.000000e+00> : vector<8x8xf32>
    %44 = tpu.matmul %41, %42, %cst_23 {dimension_numbers = #tpu.dot_dimension_numbers<[1], [1], [0], [0], [0, 0, 1, 0], [], []>} : vector<8x8xf32>, vector<8x8xf32>, vector<8x8xf32> -> vector<8x8xf32>
    %c1 = arith.constant 1 : index
    %c0_24 = arith.constant 0 : index
    %c0_25 = arith.constant 0 : index
    %45 = vector.load %arg3[%c1, %c0_24, %c0_25] : memref<4x8x8xf32, #tpu.memory_space<vmem>>, vector<1x8x8xf32>
    %46 = vector.shape_cast %45 : vector<1x8x8xf32> to vector<8x8xf32>
    %47 = arith.addf %44, %46 : vector<8x8xf32>
    %cst_26 = arith.constant -1.000000e+30 : f32
    %48 = vector.broadcast %cst_26 : f32 to vector<8x8xf32>
    %49 = arith.select %11, %47, %48 : vector<8x8xi1>, vector<8x8xf32>
    %cst_27 = arith.constant dense<0xFF800000> : vector<8xf32>
    %50 = vector.multi_reduction <maximumf>, %49, %cst_27 [1] : vector<8x8xf32> to vector<8xf32>
    %51 = vector.shape_cast %50 : vector<8xf32> to vector<8x1xf32>
    %52 = vector.broadcast %51 : vector<8x1xf32> to vector<8x8xf32>
    %53 = arith.subf %49, %52 : vector<8x8xf32>
    %54 = math.exp %53 : vector<8x8xf32>
    %cst_28 = arith.constant dense<0.000000e+00> : vector<8xf32>
    %55 = vector.multi_reduction <add>, %54, %cst_28 [1] : vector<8x8xf32> to vector<8xf32>
    %56 = vector.shape_cast %55 : vector<8xf32> to vector<8x1xf32>
    %57 = tpu.reciprocal %56 {approx = true} : vector<8x1xf32> -> vector<8x1xf32>
    %58 = vector.broadcast %57 : vector<8x1xf32> to vector<8x8xf32>
    %59 = arith.mulf %54, %58 : vector<8x8xf32>
    %cst_29 = arith.constant dense<0.000000e+00> : vector<8x8xf32>
    %60 = tpu.matmul %59, %43, %cst_29 {dimension_numbers = #tpu.dot_dimension_numbers<[1], [0], [0], [1], [0, 0, 1, 1], [], []>} : vector<8x8xf32>, vector<8x8xf32>, vector<8x8xf32> -> vector<8x8xf32>
    %61 = vector.extract_strided_slice %12 {offsets = [8, 0], sizes = [8, 32], strides = [1, 1]} : vector<32x32xf32> to vector<8x32xf32>
    %cst_30 = arith.constant dense<0.000000e+00> : vector<8x32xf32>
    %62 = tpu.matmul %60, %61, %cst_30 {dimension_numbers = #tpu.dot_dimension_numbers<[1], [0], [0], [1], [0, 0, 1, 1], [], []>} : vector<8x8xf32>, vector<8x32xf32>, vector<8x32xf32> -> vector<8x32xf32>
    %63 = arith.addf %38, %62 : vector<8x32xf32>
    %64 = vector.extract_strided_slice %8 {offsets = [0, 16], sizes = [8, 8], strides = [1, 1]} : vector<8x96xf32> to vector<8x8xf32>
    %cst_31 = arith.constant 0.353553385 : f32
    %65 = vector.broadcast %cst_31 : f32 to vector<8x8xf32>
    %66 = arith.mulf %64, %65 : vector<8x8xf32>
    %67 = vector.extract_strided_slice %8 {offsets = [0, 48], sizes = [8, 8], strides = [1, 1]} : vector<8x96xf32> to vector<8x8xf32>
    %68 = vector.extract_strided_slice %8 {offsets = [0, 80], sizes = [8, 8], strides = [1, 1]} : vector<8x96xf32> to vector<8x8xf32>
    %cst_32 = arith.constant dense<0.000000e+00> : vector<8x8xf32>
    %69 = tpu.matmul %66, %67, %cst_32 {dimension_numbers = #tpu.dot_dimension_numbers<[1], [1], [0], [0], [0, 0, 1, 0], [], []>} : vector<8x8xf32>, vector<8x8xf32>, vector<8x8xf32> -> vector<8x8xf32>
    %c2 = arith.constant 2 : index
    %c0_33 = arith.constant 0 : index
    %c0_34 = arith.constant 0 : index
    %70 = vector.load %arg3[%c2, %c0_33, %c0_34] : memref<4x8x8xf32, #tpu.memory_space<vmem>>, vector<1x8x8xf32>
    %71 = vector.shape_cast %70 : vector<1x8x8xf32> to vector<8x8xf32>
    %72 = arith.addf %69, %71 : vector<8x8xf32>
    %cst_35 = arith.constant -1.000000e+30 : f32
    %73 = vector.broadcast %cst_35 : f32 to vector<8x8xf32>
    %74 = arith.select %11, %72, %73 : vector<8x8xi1>, vector<8x8xf32>
    %cst_36 = arith.constant dense<0xFF800000> : vector<8xf32>
    %75 = vector.multi_reduction <maximumf>, %74, %cst_36 [1] : vector<8x8xf32> to vector<8xf32>
    %76 = vector.shape_cast %75 : vector<8xf32> to vector<8x1xf32>
    %77 = vector.broadcast %76 : vector<8x1xf32> to vector<8x8xf32>
    %78 = arith.subf %74, %77 : vector<8x8xf32>
    %79 = math.exp %78 : vector<8x8xf32>
    %cst_37 = arith.constant dense<0.000000e+00> : vector<8xf32>
    %80 = vector.multi_reduction <add>, %79, %cst_37 [1] : vector<8x8xf32> to vector<8xf32>
    %81 = vector.shape_cast %80 : vector<8xf32> to vector<8x1xf32>
    %82 = tpu.reciprocal %81 {approx = true} : vector<8x1xf32> -> vector<8x1xf32>
    %83 = vector.broadcast %82 : vector<8x1xf32> to vector<8x8xf32>
    %84 = arith.mulf %79, %83 : vector<8x8xf32>
    %cst_38 = arith.constant dense<0.000000e+00> : vector<8x8xf32>
    %85 = tpu.matmul %84, %68, %cst_38 {dimension_numbers = #tpu.dot_dimension_numbers<[1], [0], [0], [1], [0, 0, 1, 1], [], []>} : vector<8x8xf32>, vector<8x8xf32>, vector<8x8xf32> -> vector<8x8xf32>
    %86 = vector.extract_strided_slice %12 {offsets = [16, 0], sizes = [8, 32], strides = [1, 1]} : vector<32x32xf32> to vector<8x32xf32>
    %cst_39 = arith.constant dense<0.000000e+00> : vector<8x32xf32>
    %87 = tpu.matmul %85, %86, %cst_39 {dimension_numbers = #tpu.dot_dimension_numbers<[1], [0], [0], [1], [0, 0, 1, 1], [], []>} : vector<8x8xf32>, vector<8x32xf32>, vector<8x32xf32> -> vector<8x32xf32>
    %88 = arith.addf %63, %87 : vector<8x32xf32>
    %89 = vector.extract_strided_slice %8 {offsets = [0, 24], sizes = [8, 8], strides = [1, 1]} : vector<8x96xf32> to vector<8x8xf32>
    %cst_40 = arith.constant 0.353553385 : f32
    %90 = vector.broadcast %cst_40 : f32 to vector<8x8xf32>
    %91 = arith.mulf %89, %90 : vector<8x8xf32>
    %92 = vector.extract_strided_slice %8 {offsets = [0, 56], sizes = [8, 8], strides = [1, 1]} : vector<8x96xf32> to vector<8x8xf32>
    %93 = vector.extract_strided_slice %8 {offsets = [0, 88], sizes = [8, 8], strides = [1, 1]} : vector<8x96xf32> to vector<8x8xf32>
    %cst_41 = arith.constant dense<0.000000e+00> : vector<8x8xf32>
    %94 = tpu.matmul %91, %92, %cst_41 {dimension_numbers = #tpu.dot_dimension_numbers<[1], [1], [0], [0], [0, 0, 1, 0], [], []>} : vector<8x8xf32>, vector<8x8xf32>, vector<8x8xf32> -> vector<8x8xf32>
    %c3 = arith.constant 3 : index
    %c0_42 = arith.constant 0 : index
    %c0_43 = arith.constant 0 : index
    %95 = vector.load %arg3[%c3, %c0_42, %c0_43] : memref<4x8x8xf32, #tpu.memory_space<vmem>>, vector<1x8x8xf32>
    %96 = vector.shape_cast %95 : vector<1x8x8xf32> to vector<8x8xf32>
    %97 = arith.addf %94, %96 : vector<8x8xf32>
    %cst_44 = arith.constant -1.000000e+30 : f32
    %98 = vector.broadcast %cst_44 : f32 to vector<8x8xf32>
    %99 = arith.select %11, %97, %98 : vector<8x8xi1>, vector<8x8xf32>
    %cst_45 = arith.constant dense<0xFF800000> : vector<8xf32>
    %100 = vector.multi_reduction <maximumf>, %99, %cst_45 [1] : vector<8x8xf32> to vector<8xf32>
    %101 = vector.shape_cast %100 : vector<8xf32> to vector<8x1xf32>
    %102 = vector.broadcast %101 : vector<8x1xf32> to vector<8x8xf32>
    %103 = arith.subf %99, %102 : vector<8x8xf32>
    %104 = math.exp %103 : vector<8x8xf32>
    %cst_46 = arith.constant dense<0.000000e+00> : vector<8xf32>
    %105 = vector.multi_reduction <add>, %104, %cst_46 [1] : vector<8x8xf32> to vector<8xf32>
    %106 = vector.shape_cast %105 : vector<8xf32> to vector<8x1xf32>
    %107 = tpu.reciprocal %106 {approx = true} : vector<8x1xf32> -> vector<8x1xf32>
    %108 = vector.broadcast %107 : vector<8x1xf32> to vector<8x8xf32>
    %109 = arith.mulf %104, %108 : vector<8x8xf32>
    %cst_47 = arith.constant dense<0.000000e+00> : vector<8x8xf32>
    %110 = tpu.matmul %109, %93, %cst_47 {dimension_numbers = #tpu.dot_dimension_numbers<[1], [0], [0], [1], [0, 0, 1, 1], [], []>} : vector<8x8xf32>, vector<8x8xf32>, vector<8x8xf32> -> vector<8x8xf32>
    %111 = vector.extract_strided_slice %12 {offsets = [24, 0], sizes = [8, 32], strides = [1, 1]} : vector<32x32xf32> to vector<8x32xf32>
    %cst_48 = arith.constant dense<0.000000e+00> : vector<8x32xf32>
    %112 = tpu.matmul %110, %111, %cst_48 {dimension_numbers = #tpu.dot_dimension_numbers<[1], [0], [0], [1], [0, 0, 1, 1], [], []>} : vector<8x8xf32>, vector<8x32xf32>, vector<8x32xf32> -> vector<8x32xf32>
    %113 = arith.addf %88, %112 : vector<8x32xf32>
    %c0_49 = arith.constant 0 : index
    %c0_50 = arith.constant 0 : index
    %114 = vector.load %arg7[%c0_49, %c0_50] : memref<1x32xf32, #tpu.memory_space<vmem>>, vector<1x32xf32>
    %115 = vector.broadcast %114 : vector<1x32xf32> to vector<8x32xf32>
    %116 = arith.addf %113, %115 : vector<8x32xf32>
    %117 = arith.addf %116, %1 : vector<8x32xf32>
    %cst_51 = arith.constant dense<0.000000e+00> : vector<8xf32>
    %118 = vector.multi_reduction <add>, %117, %cst_51 [1] : vector<8x32xf32> to vector<8xf32>
    %119 = vector.shape_cast %118 : vector<8xf32> to vector<8x1xf32>
    %cst_52 = arith.constant 3.200000e+01 : f32
    %120 = vector.broadcast %cst_52 : f32 to vector<8x1xf32>
    %121 = arith.divf %119, %120 : vector<8x1xf32>
    %122 = vector.broadcast %121 : vector<8x1xf32> to vector<8x32xf32>
    %123 = arith.subf %117, %122 : vector<8x32xf32>
    %124 = arith.mulf %123, %123 : vector<8x32xf32>
    %cst_53 = arith.constant dense<0.000000e+00> : vector<8xf32>
    %125 = vector.multi_reduction <add>, %124, %cst_53 [1] : vector<8x32xf32> to vector<8xf32>
    %126 = vector.shape_cast %125 : vector<8xf32> to vector<8x1xf32>
    %cst_54 = arith.constant 3.200000e+01 : f32
    %127 = vector.broadcast %cst_54 : f32 to vector<8x1xf32>
    %128 = arith.divf %126, %127 : vector<8x1xf32>
    %cst_55 = arith.constant 9.99999974E-6 : f32
    %129 = vector.broadcast %cst_55 : f32 to vector<8x1xf32>
    %130 = arith.addf %128, %129 : vector<8x1xf32>
    %131 = math.rsqrt %130 : vector<8x1xf32>
    %132 = vector.broadcast %131 : vector<8x1xf32> to vector<8x32xf32>
    %133 = arith.mulf %123, %132 : vector<8x32xf32>
    %c0_56 = arith.constant 0 : index
    %c0_57 = arith.constant 0 : index
    %134 = vector.load %arg8[%c0_56, %c0_57] : memref<1x32xf32, #tpu.memory_space<vmem>>, vector<1x32xf32>
    %135 = vector.broadcast %134 : vector<1x32xf32> to vector<8x32xf32>
    %136 = arith.mulf %133, %135 : vector<8x32xf32>
    %c0_58 = arith.constant 0 : index
    %c0_59 = arith.constant 0 : index
    %137 = vector.load %arg9[%c0_58, %c0_59] : memref<1x32xf32, #tpu.memory_space<vmem>>, vector<1x32xf32>
    %138 = vector.broadcast %137 : vector<1x32xf32> to vector<8x32xf32>
    %139 = arith.addf %136, %138 : vector<8x32xf32>
    %c0_60 = arith.constant 0 : index
    %c0_61 = arith.constant 0 : index
    %140 = vector.load %arg10[%c0_60, %c0_61] : memref<32x32xf32, #tpu.memory_space<vmem>>, vector<32x32xf32>
    %cst_62 = arith.constant dense<0.000000e+00> : vector<8x32xf32>
    %141 = tpu.matmul %139, %140, %cst_62 {dimension_numbers = #tpu.dot_dimension_numbers<[1], [0], [0], [1], [0, 0, 1, 1], [], []>} : vector<8x32xf32>, vector<32x32xf32>, vector<8x32xf32> -> vector<8x32xf32>
    %c0_63 = arith.constant 0 : index
    %c0_64 = arith.constant 0 : index
    %142 = vector.load %arg11[%c0_63, %c0_64] : memref<1x32xf32, #tpu.memory_space<vmem>>, vector<1x32xf32>
    %143 = vector.broadcast %142 : vector<1x32xf32> to vector<8x32xf32>
    %144 = arith.addf %141, %143 : vector<8x32xf32>
    %c0_65 = arith.constant 0 : index
    %c0_66 = arith.constant 0 : index
    %145 = vector.load %arg12[%c0_65, %c0_66] : memref<32x64xf32, #tpu.memory_space<vmem>>, vector<32x64xf32>
    %cst_67 = arith.constant dense<0.000000e+00> : vector<8x64xf32>
    %146 = tpu.matmul %3, %145, %cst_67 {dimension_numbers = #tpu.dot_dimension_numbers<[1], [0], [0], [1], [0, 0, 1, 1], [], []>} : vector<8x32xf32>, vector<32x64xf32>, vector<8x64xf32> -> vector<8x64xf32>
    %c0_68 = arith.constant 0 : index
    %c0_69 = arith.constant 0 : index
    %147 = vector.load %arg13[%c0_68, %c0_69] : memref<1x64xf32, #tpu.memory_space<vmem>>, vector<1x64xf32>
    %148 = vector.broadcast %147 : vector<1x64xf32> to vector<8x64xf32>
    %149 = arith.addf %146, %148 : vector<8x64xf32>
    %c0_70 = arith.constant 0 : index
    %c0_71 = arith.constant 0 : index
    %150 = vector.load %arg14[%c0_70, %c0_71] : memref<32x32xf32, #tpu.memory_space<vmem>>, vector<32x32xf32>
    %cst_72 = arith.constant 0.000000e+00 : f32
    %151 = vector.broadcast %cst_72 : f32 to vector<8x32xf32>
    %152 = vector.extract_strided_slice %144 {offsets = [0, 0], sizes = [8, 8], strides = [1, 1]} : vector<8x32xf32> to vector<8x8xf32>
    %cst_73 = arith.constant 0.353553385 : f32
    %153 = vector.broadcast %cst_73 : f32 to vector<8x8xf32>
    %154 = arith.mulf %152, %153 : vector<8x8xf32>
    %155 = vector.extract_strided_slice %149 {offsets = [0, 0], sizes = [8, 8], strides = [1, 1]} : vector<8x64xf32> to vector<8x8xf32>
    %156 = vector.extract_strided_slice %149 {offsets = [0, 32], sizes = [8, 8], strides = [1, 1]} : vector<8x64xf32> to vector<8x8xf32>
    %cst_74 = arith.constant dense<0.000000e+00> : vector<8x8xf32>
    %157 = tpu.matmul %154, %155, %cst_74 {dimension_numbers = #tpu.dot_dimension_numbers<[1], [1], [0], [0], [0, 0, 1, 0], [], []>} : vector<8x8xf32>, vector<8x8xf32>, vector<8x8xf32> -> vector<8x8xf32>
    %cst_75 = arith.constant dense<0xFF800000> : vector<8xf32>
    %158 = vector.multi_reduction <maximumf>, %157, %cst_75 [1] : vector<8x8xf32> to vector<8xf32>
    %159 = vector.shape_cast %158 : vector<8xf32> to vector<8x1xf32>
    %160 = vector.broadcast %159 : vector<8x1xf32> to vector<8x8xf32>
    %161 = arith.subf %157, %160 : vector<8x8xf32>
    %162 = math.exp %161 : vector<8x8xf32>
    %cst_76 = arith.constant dense<0.000000e+00> : vector<8xf32>
    %163 = vector.multi_reduction <add>, %162, %cst_76 [1] : vector<8x8xf32> to vector<8xf32>
    %164 = vector.shape_cast %163 : vector<8xf32> to vector<8x1xf32>
    %165 = tpu.reciprocal %164 {approx = true} : vector<8x1xf32> -> vector<8x1xf32>
    %166 = vector.broadcast %165 : vector<8x1xf32> to vector<8x8xf32>
    %167 = arith.mulf %162, %166 : vector<8x8xf32>
    %cst_77 = arith.constant dense<0.000000e+00> : vector<8x8xf32>
    %168 = tpu.matmul %167, %156, %cst_77 {dimension_numbers = #tpu.dot_dimension_numbers<[1], [0], [0], [1], [0, 0, 1, 1], [], []>} : vector<8x8xf32>, vector<8x8xf32>, vector<8x8xf32> -> vector<8x8xf32>
    %169 = vector.extract_strided_slice %150 {offsets = [0, 0], sizes = [8, 32], strides = [1, 1]} : vector<32x32xf32> to vector<8x32xf32>
    %cst_78 = arith.constant dense<0.000000e+00> : vector<8x32xf32>
    %170 = tpu.matmul %168, %169, %cst_78 {dimension_numbers = #tpu.dot_dimension_numbers<[1], [0], [0], [1], [0, 0, 1, 1], [], []>} : vector<8x8xf32>, vector<8x32xf32>, vector<8x32xf32> -> vector<8x32xf32>
    %171 = arith.addf %151, %170 : vector<8x32xf32>
    %172 = vector.extract_strided_slice %144 {offsets = [0, 8], sizes = [8, 8], strides = [1, 1]} : vector<8x32xf32> to vector<8x8xf32>
    %cst_79 = arith.constant 0.353553385 : f32
    %173 = vector.broadcast %cst_79 : f32 to vector<8x8xf32>
    %174 = arith.mulf %172, %173 : vector<8x8xf32>
    %175 = vector.extract_strided_slice %149 {offsets = [0, 8], sizes = [8, 8], strides = [1, 1]} : vector<8x64xf32> to vector<8x8xf32>
    %176 = vector.extract_strided_slice %149 {offsets = [0, 40], sizes = [8, 8], strides = [1, 1]} : vector<8x64xf32> to vector<8x8xf32>
    %cst_80 = arith.constant dense<0.000000e+00> : vector<8x8xf32>
    %177 = tpu.matmul %174, %175, %cst_80 {dimension_numbers = #tpu.dot_dimension_numbers<[1], [1], [0], [0], [0, 0, 1, 0], [], []>} : vector<8x8xf32>, vector<8x8xf32>, vector<8x8xf32> -> vector<8x8xf32>
    %cst_81 = arith.constant dense<0xFF800000> : vector<8xf32>
    %178 = vector.multi_reduction <maximumf>, %177, %cst_81 [1] : vector<8x8xf32> to vector<8xf32>
    %179 = vector.shape_cast %178 : vector<8xf32> to vector<8x1xf32>
    %180 = vector.broadcast %179 : vector<8x1xf32> to vector<8x8xf32>
    %181 = arith.subf %177, %180 : vector<8x8xf32>
    %182 = math.exp %181 : vector<8x8xf32>
    %cst_82 = arith.constant dense<0.000000e+00> : vector<8xf32>
    %183 = vector.multi_reduction <add>, %182, %cst_82 [1] : vector<8x8xf32> to vector<8xf32>
    %184 = vector.shape_cast %183 : vector<8xf32> to vector<8x1xf32>
    %185 = tpu.reciprocal %184 {approx = true} : vector<8x1xf32> -> vector<8x1xf32>
    %186 = vector.broadcast %185 : vector<8x1xf32> to vector<8x8xf32>
    %187 = arith.mulf %182, %186 : vector<8x8xf32>
    %cst_83 = arith.constant dense<0.000000e+00> : vector<8x8xf32>
    %188 = tpu.matmul %187, %176, %cst_83 {dimension_numbers = #tpu.dot_dimension_numbers<[1], [0], [0], [1], [0, 0, 1, 1], [], []>} : vector<8x8xf32>, vector<8x8xf32>, vector<8x8xf32> -> vector<8x8xf32>
    %189 = vector.extract_strided_slice %150 {offsets = [8, 0], sizes = [8, 32], strides = [1, 1]} : vector<32x32xf32> to vector<8x32xf32>
    %cst_84 = arith.constant dense<0.000000e+00> : vector<8x32xf32>
    %190 = tpu.matmul %188, %189, %cst_84 {dimension_numbers = #tpu.dot_dimension_numbers<[1], [0], [0], [1], [0, 0, 1, 1], [], []>} : vector<8x8xf32>, vector<8x32xf32>, vector<8x32xf32> -> vector<8x32xf32>
    %191 = arith.addf %171, %190 : vector<8x32xf32>
    %192 = vector.extract_strided_slice %144 {offsets = [0, 16], sizes = [8, 8], strides = [1, 1]} : vector<8x32xf32> to vector<8x8xf32>
    %cst_85 = arith.constant 0.353553385 : f32
    %193 = vector.broadcast %cst_85 : f32 to vector<8x8xf32>
    %194 = arith.mulf %192, %193 : vector<8x8xf32>
    %195 = vector.extract_strided_slice %149 {offsets = [0, 16], sizes = [8, 8], strides = [1, 1]} : vector<8x64xf32> to vector<8x8xf32>
    %196 = vector.extract_strided_slice %149 {offsets = [0, 48], sizes = [8, 8], strides = [1, 1]} : vector<8x64xf32> to vector<8x8xf32>
    %cst_86 = arith.constant dense<0.000000e+00> : vector<8x8xf32>
    %197 = tpu.matmul %194, %195, %cst_86 {dimension_numbers = #tpu.dot_dimension_numbers<[1], [1], [0], [0], [0, 0, 1, 0], [], []>} : vector<8x8xf32>, vector<8x8xf32>, vector<8x8xf32> -> vector<8x8xf32>
    %cst_87 = arith.constant dense<0xFF800000> : vector<8xf32>
    %198 = vector.multi_reduction <maximumf>, %197, %cst_87 [1] : vector<8x8xf32> to vector<8xf32>
    %199 = vector.shape_cast %198 : vector<8xf32> to vector<8x1xf32>
    %200 = vector.broadcast %199 : vector<8x1xf32> to vector<8x8xf32>
    %201 = arith.subf %197, %200 : vector<8x8xf32>
    %202 = math.exp %201 : vector<8x8xf32>
    %cst_88 = arith.constant dense<0.000000e+00> : vector<8xf32>
    %203 = vector.multi_reduction <add>, %202, %cst_88 [1] : vector<8x8xf32> to vector<8xf32>
    %204 = vector.shape_cast %203 : vector<8xf32> to vector<8x1xf32>
    %205 = tpu.reciprocal %204 {approx = true} : vector<8x1xf32> -> vector<8x1xf32>
    %206 = vector.broadcast %205 : vector<8x1xf32> to vector<8x8xf32>
    %207 = arith.mulf %202, %206 : vector<8x8xf32>
    %cst_89 = arith.constant dense<0.000000e+00> : vector<8x8xf32>
    %208 = tpu.matmul %207, %196, %cst_89 {dimension_numbers = #tpu.dot_dimension_numbers<[1], [0], [0], [1], [0, 0, 1, 1], [], []>} : vector<8x8xf32>, vector<8x8xf32>, vector<8x8xf32> -> vector<8x8xf32>
    %209 = vector.extract_strided_slice %150 {offsets = [16, 0], sizes = [8, 32], strides = [1, 1]} : vector<32x32xf32> to vector<8x32xf32>
    %cst_90 = arith.constant dense<0.000000e+00> : vector<8x32xf32>
    %210 = tpu.matmul %208, %209, %cst_90 {dimension_numbers = #tpu.dot_dimension_numbers<[1], [0], [0], [1], [0, 0, 1, 1], [], []>} : vector<8x8xf32>, vector<8x32xf32>, vector<8x32xf32> -> vector<8x32xf32>
    %211 = arith.addf %191, %210 : vector<8x32xf32>
    %212 = vector.extract_strided_slice %144 {offsets = [0, 24], sizes = [8, 8], strides = [1, 1]} : vector<8x32xf32> to vector<8x8xf32>
    %cst_91 = arith.constant 0.353553385 : f32
    %213 = vector.broadcast %cst_91 : f32 to vector<8x8xf32>
    %214 = arith.mulf %212, %213 : vector<8x8xf32>
    %215 = vector.extract_strided_slice %149 {offsets = [0, 24], sizes = [8, 8], strides = [1, 1]} : vector<8x64xf32> to vector<8x8xf32>
    %216 = vector.extract_strided_slice %149 {offsets = [0, 56], sizes = [8, 8], strides = [1, 1]} : vector<8x64xf32> to vector<8x8xf32>
    %cst_92 = arith.constant dense<0.000000e+00> : vector<8x8xf32>
    %217 = tpu.matmul %214, %215, %cst_92 {dimension_numbers = #tpu.dot_dimension_numbers<[1], [1], [0], [0], [0, 0, 1, 0], [], []>} : vector<8x8xf32>, vector<8x8xf32>, vector<8x8xf32> -> vector<8x8xf32>
    %cst_93 = arith.constant dense<0xFF800000> : vector<8xf32>
    %218 = vector.multi_reduction <maximumf>, %217, %cst_93 [1] : vector<8x8xf32> to vector<8xf32>
    %219 = vector.shape_cast %218 : vector<8xf32> to vector<8x1xf32>
    %220 = vector.broadcast %219 : vector<8x1xf32> to vector<8x8xf32>
    %221 = arith.subf %217, %220 : vector<8x8xf32>
    %222 = math.exp %221 : vector<8x8xf32>
    %cst_94 = arith.constant dense<0.000000e+00> : vector<8xf32>
    %223 = vector.multi_reduction <add>, %222, %cst_94 [1] : vector<8x8xf32> to vector<8xf32>
    %224 = vector.shape_cast %223 : vector<8xf32> to vector<8x1xf32>
    %225 = tpu.reciprocal %224 {approx = true} : vector<8x1xf32> -> vector<8x1xf32>
    %226 = vector.broadcast %225 : vector<8x1xf32> to vector<8x8xf32>
    %227 = arith.mulf %222, %226 : vector<8x8xf32>
    %cst_95 = arith.constant dense<0.000000e+00> : vector<8x8xf32>
    %228 = tpu.matmul %227, %216, %cst_95 {dimension_numbers = #tpu.dot_dimension_numbers<[1], [0], [0], [1], [0, 0, 1, 1], [], []>} : vector<8x8xf32>, vector<8x8xf32>, vector<8x8xf32> -> vector<8x8xf32>
    %229 = vector.extract_strided_slice %150 {offsets = [24, 0], sizes = [8, 32], strides = [1, 1]} : vector<32x32xf32> to vector<8x32xf32>
    %cst_96 = arith.constant dense<0.000000e+00> : vector<8x32xf32>
    %230 = tpu.matmul %228, %229, %cst_96 {dimension_numbers = #tpu.dot_dimension_numbers<[1], [0], [0], [1], [0, 0, 1, 1], [], []>} : vector<8x8xf32>, vector<8x32xf32>, vector<8x32xf32> -> vector<8x32xf32>
    %231 = arith.addf %211, %230 : vector<8x32xf32>
    %c0_97 = arith.constant 0 : index
    %c0_98 = arith.constant 0 : index
    %232 = vector.load %arg15[%c0_97, %c0_98] : memref<1x32xf32, #tpu.memory_space<vmem>>, vector<1x32xf32>
    %233 = vector.broadcast %232 : vector<1x32xf32> to vector<8x32xf32>
    %234 = arith.addf %231, %233 : vector<8x32xf32>
    %235 = arith.addf %234, %139 : vector<8x32xf32>
    %cst_99 = arith.constant dense<0.000000e+00> : vector<8xf32>
    %236 = vector.multi_reduction <add>, %235, %cst_99 [1] : vector<8x32xf32> to vector<8xf32>
    %237 = vector.shape_cast %236 : vector<8xf32> to vector<8x1xf32>
    %cst_100 = arith.constant 3.200000e+01 : f32
    %238 = vector.broadcast %cst_100 : f32 to vector<8x1xf32>
    %239 = arith.divf %237, %238 : vector<8x1xf32>
    %240 = vector.broadcast %239 : vector<8x1xf32> to vector<8x32xf32>
    %241 = arith.subf %235, %240 : vector<8x32xf32>
    %242 = arith.mulf %241, %241 : vector<8x32xf32>
    %cst_101 = arith.constant dense<0.000000e+00> : vector<8xf32>
    %243 = vector.multi_reduction <add>, %242, %cst_101 [1] : vector<8x32xf32> to vector<8xf32>
    %244 = vector.shape_cast %243 : vector<8xf32> to vector<8x1xf32>
    %cst_102 = arith.constant 3.200000e+01 : f32
    %245 = vector.broadcast %cst_102 : f32 to vector<8x1xf32>
    %246 = arith.divf %244, %245 : vector<8x1xf32>
    %cst_103 = arith.constant 9.99999974E-6 : f32
    %247 = vector.broadcast %cst_103 : f32 to vector<8x1xf32>
    %248 = arith.addf %246, %247 : vector<8x1xf32>
    %249 = math.rsqrt %248 : vector<8x1xf32>
    %250 = vector.broadcast %249 : vector<8x1xf32> to vector<8x32xf32>
    %251 = arith.mulf %241, %250 : vector<8x32xf32>
    %c0_104 = arith.constant 0 : index
    %c0_105 = arith.constant 0 : index
    %252 = vector.load %arg16[%c0_104, %c0_105] : memref<1x32xf32, #tpu.memory_space<vmem>>, vector<1x32xf32>
    %253 = vector.broadcast %252 : vector<1x32xf32> to vector<8x32xf32>
    %254 = arith.mulf %251, %253 : vector<8x32xf32>
    %c0_106 = arith.constant 0 : index
    %c0_107 = arith.constant 0 : index
    %255 = vector.load %arg17[%c0_106, %c0_107] : memref<1x32xf32, #tpu.memory_space<vmem>>, vector<1x32xf32>
    %256 = vector.broadcast %255 : vector<1x32xf32> to vector<8x32xf32>
    %257 = arith.addf %254, %256 : vector<8x32xf32>
    %c0_108 = arith.constant 0 : index
    %c0_109 = arith.constant 0 : index
    %258 = vector.load %arg18[%c0_108, %c0_109] : memref<32x32xf32, #tpu.memory_space<vmem>>, vector<32x32xf32>
    %cst_110 = arith.constant dense<0.000000e+00> : vector<8x32xf32>
    %259 = tpu.matmul %257, %258, %cst_110 {dimension_numbers = #tpu.dot_dimension_numbers<[1], [0], [0], [1], [0, 0, 1, 1], [], []>} : vector<8x32xf32>, vector<32x32xf32>, vector<8x32xf32> -> vector<8x32xf32>
    %c0_111 = arith.constant 0 : index
    %c0_112 = arith.constant 0 : index
    %260 = vector.load %arg19[%c0_111, %c0_112] : memref<1x32xf32, #tpu.memory_space<vmem>>, vector<1x32xf32>
    %261 = vector.broadcast %260 : vector<1x32xf32> to vector<8x32xf32>
    %262 = arith.addf %259, %261 : vector<8x32xf32>
    %cst_113 = arith.constant 0.000000e+00 : f32
    %263 = vector.broadcast %cst_113 : f32 to vector<8x32xf32>
    %264 = arith.maximumf %262, %263 : vector<8x32xf32>
    %c0_114 = arith.constant 0 : index
    %c0_115 = arith.constant 0 : index
    %265 = vector.load %arg20[%c0_114, %c0_115] : memref<32x32xf32, #tpu.memory_space<vmem>>, vector<32x32xf32>
    %cst_116 = arith.constant dense<0.000000e+00> : vector<8x32xf32>
    %266 = tpu.matmul %264, %265, %cst_116 {dimension_numbers = #tpu.dot_dimension_numbers<[1], [0], [0], [1], [0, 0, 1, 1], [], []>} : vector<8x32xf32>, vector<32x32xf32>, vector<8x32xf32> -> vector<8x32xf32>
    %c0_117 = arith.constant 0 : index
    %c0_118 = arith.constant 0 : index
    %267 = vector.load %arg21[%c0_117, %c0_118] : memref<1x32xf32, #tpu.memory_space<vmem>>, vector<1x32xf32>
    %268 = vector.broadcast %267 : vector<1x32xf32> to vector<8x32xf32>
    %269 = arith.addf %266, %268 : vector<8x32xf32>
    %270 = arith.addf %269, %257 : vector<8x32xf32>
    %cst_119 = arith.constant dense<0.000000e+00> : vector<8xf32>
    %271 = vector.multi_reduction <add>, %270, %cst_119 [1] : vector<8x32xf32> to vector<8xf32>
    %272 = vector.shape_cast %271 : vector<8xf32> to vector<8x1xf32>
    %cst_120 = arith.constant 3.200000e+01 : f32
    %273 = vector.broadcast %cst_120 : f32 to vector<8x1xf32>
    %274 = arith.divf %272, %273 : vector<8x1xf32>
    %275 = vector.broadcast %274 : vector<8x1xf32> to vector<8x32xf32>
    %276 = arith.subf %270, %275 : vector<8x32xf32>
    %277 = arith.mulf %276, %276 : vector<8x32xf32>
    %cst_121 = arith.constant dense<0.000000e+00> : vector<8xf32>
    %278 = vector.multi_reduction <add>, %277, %cst_121 [1] : vector<8x32xf32> to vector<8xf32>
    %279 = vector.shape_cast %278 : vector<8xf32> to vector<8x1xf32>
    %cst_122 = arith.constant 3.200000e+01 : f32
    %280 = vector.broadcast %cst_122 : f32 to vector<8x1xf32>
    %281 = arith.divf %279, %280 : vector<8x1xf32>
    %cst_123 = arith.constant 9.99999974E-6 : f32
    %282 = vector.broadcast %cst_123 : f32 to vector<8x1xf32>
    %283 = arith.addf %281, %282 : vector<8x1xf32>
    %284 = math.rsqrt %283 : vector<8x1xf32>
    %285 = vector.broadcast %284 : vector<8x1xf32> to vector<8x32xf32>
    %286 = arith.mulf %276, %285 : vector<8x32xf32>
    %c0_124 = arith.constant 0 : index
    %c0_125 = arith.constant 0 : index
    %287 = vector.load %arg22[%c0_124, %c0_125] : memref<1x32xf32, #tpu.memory_space<vmem>>, vector<1x32xf32>
    %288 = vector.broadcast %287 : vector<1x32xf32> to vector<8x32xf32>
    %289 = arith.mulf %286, %288 : vector<8x32xf32>
    %c0_126 = arith.constant 0 : index
    %c0_127 = arith.constant 0 : index
    %290 = vector.load %arg23[%c0_126, %c0_127] : memref<1x32xf32, #tpu.memory_space<vmem>>, vector<1x32xf32>
    %291 = vector.broadcast %290 : vector<1x32xf32> to vector<8x32xf32>
    %292 = arith.addf %289, %291 : vector<8x32xf32>
    %c0_128 = arith.constant 0 : index
    %c0_129 = arith.constant 0 : index
    %c0_130 = arith.constant 0 : index
    %293 = vector.load %arg24[%c0_128, %c0_129, %c0_130] : memref<1x8x32xf32, #tpu.memory_space<vmem>>, vector<1x8x32xf32>
    %294 = vector.shape_cast %293 : vector<1x8x32xf32> to vector<8x32xf32>
    %295 = vector.shape_cast %292 : vector<8x32xf32> to vector<1x8x32xf32>
    tpu.vector_store %arg24[%c0_128, %c0_129, %c0_130], %295 {strides = array<i32>} : memref<1x8x32xf32, #tpu.memory_space<vmem>>, vector<1x8x32xf32>,
    return
  }
  func.func @transform_0(%arg0: i32) -> (i32, i32, i32) {
    %c0_i32 = arith.constant 0 : i32
    %c0_i32_0 = arith.constant 0 : i32
    %c0_i32_1 = arith.constant 0 : i32
    return %arg0, %c0_i32, %c0_i32_0 : i32, i32, i32
  }
  func.func @transform_1(%arg0: i32) -> (i32, i32, i32) {
    %c0_i32 = arith.constant 0 : i32
    %c0_i32_0 = arith.constant 0 : i32
    %c0_i32_1 = arith.constant 0 : i32
    return %arg0, %c0_i32, %c0_i32_0 : i32, i32, i32
  }
  func.func @transform_2(%arg0: i32) -> (i32, i32, i32) {
    %c0_i32 = arith.constant 0 : i32
    %c0_i32_0 = arith.constant 0 : i32
    %c0_i32_1 = arith.constant 0 : i32
    %c0_i32_2 = arith.constant 0 : i32
    return %c0_i32, %c0_i32_0, %c0_i32_1 : i32, i32, i32
  }
  func.func @transform_3(%arg0: i32) -> (i32, i32) {
    %c0_i32 = arith.constant 0 : i32
    %c0_i32_0 = arith.constant 0 : i32
    %c0_i32_1 = arith.constant 0 : i32
    return %c0_i32, %c0_i32_0 : i32, i32
  }
  func.func @transform_4(%arg0: i32) -> (i32, i32) {
    %c0_i32 = arith.constant 0 : i32
    %c0_i32_0 = arith.constant 0 : i32
    %c0_i32_1 = arith.constant 0 : i32
    return %c0_i32, %c0_i32_0 : i32, i32
  }
  func.func @transform_5(%arg0: i32) -> (i32, i32) {
    %c0_i32 = arith.constant 0 : i32
    %c0_i32_0 = arith.constant 0 : i32
    %c0_i32_1 = arith.constant 0 : i32
    return %c0_i32, %c0_i32_0 : i32, i32
  }
  func.func @transform_6(%arg0: i32) -> (i32, i32) {
    %c0_i32 = arith.constant 0 : i32
    %c0_i32_0 = arith.constant 0 : i32
    %c0_i32_1 = arith.constant 0 : i32
    return %c0_i32, %c0_i32_0 : i32, i32
  }
  func.func @transform_7(%arg0: i32) -> (i32, i32) {
    %c0_i32 = arith.constant 0 : i32
    %c0_i32_0 = arith.constant 0 : i32
    %c0_i32_1 = arith.constant 0 : i32
    return %c0_i32, %c0_i32_0 : i32, i32
  }
  func.func @transform_8(%arg0: i32) -> (i32, i32) {
    %c0_i32 = arith.constant 0 : i32
    %c0_i32_0 = arith.constant 0 : i32
    %c0_i32_1 = arith.constant 0 : i32
    return %c0_i32, %c0_i32_0 : i32, i32
  }
  func.func @transform_9(%arg0: i32) -> (i32, i32) {
    %c0_i32 = arith.constant 0 : i32
    %c0_i32_0 = arith.constant 0 : i32
    %c0_i32_1 = arith.constant 0 : i32
    return %c0_i32, %c0_i32_0 : i32, i32
  }
  func.func @transform_10(%arg0: i32) -> (i32, i32) {
    %c0_i32 = arith.constant 0 : i32
    %c0_i32_0 = arith.constant 0 : i32
    %c0_i32_1 = arith.constant 0 : i32
    return %c0_i32, %c0_i32_0 : i32, i32
  }
  func.func @transform_11(%arg0: i32) -> (i32, i32) {
    %c0_i32 = arith.constant 0 : i32
    %c0_i32_0 = arith.constant 0 : i32
    %c0_i32_1 = arith.constant 0 : i32
    return %c0_i32, %c0_i32_0 : i32, i32
  }
  func.func @transform_12(%arg0: i32) -> (i32, i32) {
    %c0_i32 = arith.constant 0 : i32
    %c0_i32_0 = arith.constant 0 : i32
    %c0_i32_1 = arith.constant 0 : i32
    return %c0_i32, %c0_i32_0 : i32, i32
  }
  func.func @transform_13(%arg0: i32) -> (i32, i32) {
    %c0_i32 = arith.constant 0 : i32
    %c0_i32_0 = arith.constant 0 : i32
    %c0_i32_1 = arith.constant 0 : i32
    return %c0_i32, %c0_i32_0 : i32, i32
  }
  func.func @transform_14(%arg0: i32) -> (i32, i32) {
    %c0_i32 = arith.constant 0 : i32
    %c0_i32_0 = arith.constant 0 : i32
    %c0_i32_1 = arith.constant 0 : i32
    return %c0_i32, %c0_i32_0 : i32, i32
  }
  func.func @transform_15(%arg0: i32) -> (i32, i32) {
    %c0_i32 = arith.constant 0 : i32
    %c0_i32_0 = arith.constant 0 : i32
    %c0_i32_1 = arith.constant 0 : i32
    return %c0_i32, %c0_i32_0 : i32, i32
  }
  func.func @transform_16(%arg0: i32) -> (i32, i32) {
    %c0_i32 = arith.constant 0 : i32
    %c0_i32_0 = arith.constant 0 : i32
    %c0_i32_1 = arith.constant 0 : i32
    return %c0_i32, %c0_i32_0 : i32, i32
  }
  func.func @transform_17(%arg0: i32) -> (i32, i32) {
    %c0_i32 = arith.constant 0 : i32
    %c0_i32_0 = arith.constant 0 : i32
    %c0_i32_1 = arith.constant 0 : i32
    return %c0_i32, %c0_i32_0 : i32, i32
  }
  func.func @transform_18(%arg0: i32) -> (i32, i32) {
    %c0_i32 = arith.constant 0 : i32
    %c0_i32_0 = arith.constant 0 : i32
    %c0_i32_1 = arith.constant 0 : i32
    return %c0_i32, %c0_i32_0 : i32, i32
  }
  func.func @transform_19(%arg0: i32) -> (i32, i32) {
    %c0_i32 = arith.constant 0 : i32
    %c0_i32_0 = arith.constant 0 : i32
    %c0_i32_1 = arith.constant 0 : i32
    return %c0_i32, %c0_i32_0 : i32, i32
  }
  func.func @transform_20(%arg0: i32) -> (i32, i32) {
    %c0_i32 = arith.constant 0 : i32
    %c0_i32_0 = arith.constant 0 : i32
    %c0_i32_1 = arith.constant 0 : i32
    return %c0_i32, %c0_i32_0 : i32, i32
  }
  func.func @transform_21(%arg0: i32) -> (i32, i32) {
    %c0_i32 = arith.constant 0 : i32
    %c0_i32_0 = arith.constant 0 : i32
    %c0_i32_1 = arith.constant 0 : i32
    return %c0_i32, %c0_i32_0 : i32, i32
  }
  func.func @transform_22(%arg0: i32) -> (i32, i32) {
    %c0_i32 = arith.constant 0 : i32
    %c0_i32_0 = arith.constant 0 : i32
    %c0_i32_1 = arith.constant 0 : i32
    return %c0_i32, %c0_i32_0 : i32, i32
  }
  func.func @transform_23(%arg0: i32) -> (i32, i32, i32) {
    %c0_i32 = arith.constant 0 : i32
    %c0_i32_0 = arith.constant 0 : i32
    %c0_i32_1 = arith.constant 0 : i32
    return %arg0, %c0_i32, %c0_i32_0 : i32, i32, i32
  }
}

</mosaic_0001>

<bundles_post_ra>
// kernel: tpu_custom_call.1
= control target key start
LH: loop header
LB: loop body
LE: loop exit
PB: predicated region body
PF: predicated region fallthrough
CT: control target
= control target key end

     0   :  { %s5867_s0 = inlined_call_operand.hbm [shape: f32[2,8,32], index: 0, kind: input, shape index: {}]   ;;  %s5868_s1 = inlined_call_operand.hbm [shape: f32[2,8,32], index: 1, kind: input, shape index: {}]   ;;  %s5869_s2 = inlined_call_operand.hbm [shape: f32[4,8,8], index: 2, kind: input, shape index: {}]   ;;  %s5870_s3 = inlined_call_operand.hbm [shape: f32[32,96], index: 3, kind: input, shape index: {}]   ;;  %s5871_s4 = inlined_call_operand.hbm [shape: f32[1,96], index: 4, kind: input, shape index: {}]   ;;  %s5872_s5 = inlined_call_operand.hbm [shape: f32[32,32], index: 5, kind: input, shape index: {}]   ;;  %s5873_s6 = inlined_call_operand.hbm [shape: f32[1,32], index: 6, kind: input, shape index: {}]   ;;  %s5874_s7 = inlined_call_operand.hbm [shape: f32[1,32], index: 7, kind: input, shape index: {}]   ;;  %s5875_s8 = inlined_call_operand.hbm [shape: f32[1,32], index: 8, kind: input, shape index: {}]   ;;  %s5876_s9 = inlined_call_operand.vmem [shape: f32[32,32], index: 9, kind: input, shape index: {}]   ;;  %s5877_s10 = inlined_call_operand.hbm [shape: f32[1,32], index: 10, kind: input, shape index: {}]   ;;  %s5878_s11 = inlined_call_operand.hbm [shape: f32[32,64], index: 11, kind: input, shape index: {}]   ;;  %s5879_s12 = inlined_call_operand.hbm [shape: f32[1,64], index: 12, kind: input, shape index: {}]   ;;  %s5880_s13 = inlined_call_operand.hbm [shape: f32[32,32], index: 13, kind: input, shape index: {}]   ;;  %s5881_s14 = inlined_call_operand.hbm [shape: f32[1,32], index: 14, kind: input, shape index: {}]   ;;  %s5882_s15 = inlined_call_operand.hbm [shape: f32[1,32], index: 15, kind: input, shape index: {}]   ;;  %s5883_s16 = inlined_call_operand.hbm [shape: f32[1,32], index: 16, kind: input, shape index: {}]   ;;  %s5884_s17 = inlined_call_operand.vmem [shape: f32[32,32], index: 17, kind: input, shape index: {}]   ;;  %s5885_s18 = inlined_call_operand.vmem [shape: f32[1,32], index: 18, kind: input, shape index: {}]   ;;  %s5886_s19 = inlined_call_operand.hbm [shape: f32[32,32], index: 19, kind: input, shape index: {}]   ;;  %s5887_s20 = inlined_call_operand.vmem [shape: f32[1,32], index: 20, kind: input, shape index: {}]   ;;  %s5888_s21 = inlined_call_operand.vmem [shape: f32[1,32], index: 21, kind: input, shape index: {}]   ;;  %s5889_s22 = inlined_call_operand.vmem [shape: f32[1,32], index: 22, kind: input, shape index: {}]   ;;  %s5890_s23 = inlined_call_operand.hbm [shape: f32[2,8,32], index: 23, kind: output, shape index: {}]  }
   0x1   :  { %5924 = sst [smem:[#allocation44_spill]] %s5867_s0 }
   0x2   :  { %5925 = sst [smem:[#allocation45_spill]] %s5868_s1 }
   0x3   :  { %5926 = sst [smem:[#allocation46_spill]] %s5869_s2 }
   0x4   :  { %5927 = sst [smem:[#allocation47_spill]] %s5870_s3 }
   0x5   :  { %5928 = sst [smem:[#allocation48_spill]] %s5871_s4 }
   0x6   :  { %5929 = sst [smem:[#allocation49_spill]] %s5872_s5 }
   0x7   :  { %5930 = sst [smem:[#allocation50_spill]] %s5873_s6 }
   0x8   :  { %5931 = sst [smem:[#allocation51_spill]] %s5874_s7 }
   0x9   :  { %5932 = sst [smem:[#allocation52_spill]] %s5875_s8 }
   0xa   :  { %5933 = sst [smem:[#allocation53_spill]] %s5876_s9 }
   0xb   :  { %5934 = sst [smem:[#allocation54_spill]] %s5877_s10 }
   0xc   :  { %5935 = sst [smem:[#allocation55_spill]] %s5878_s11 }
   0xd   :  { %5936 = sst [smem:[#allocation56_spill]] %s5879_s12 }
   0xe   :  { %5937 = sst [smem:[#allocation57_spill]] %s5880_s13 }
   0xf   :  { %5938 = sst [smem:[#allocation58_spill]] %s5884_s17 }
  0x10   :  { %5939 = sst [smem:[#allocation59_spill]] %s5885_s18 }
  0x11   :  { %5940 = sst [smem:[#allocation60_spill]] %s5887_s20 }
  0x12   :  { %5941 = sst [smem:[#allocation61_spill]] %s5888_s21 }
  0x13   :  { %5942 = sst [smem:[#allocation62_spill]] %s5889_s22 }
  0x14   :  { %5943 = sst [smem:[#allocation63_spill]] %s5890_s23 }
  0x15   :  { %28 = vsyncpa [#allocation3], 0 }
  0x16   :  { %30 = vsyncpa [#allocation3 + $0x1], 0 }
  0x17   :  { %31 = vsyncpa [#allocation6], 0 }
  0x18   :  { %33 = vsyncpa [#allocation6 + $0x1], 0 }
  0x19   :  { %34 = vsyncpa [#allocation9], 0 }
  0x1a   :  { %35 = vsyncpa [#allocation12], 0 }
  0x1b   :  { %36 = vsyncpa [#allocation15], 0 }
  0x1c   :  { %37 = vsyncpa [#allocation18], 0 }
  0x1d   :  { %38 = vsyncpa [#allocation21], 0 }
  0x1e   :  { %39 = vsyncpa [#allocation24], 0 }
  0x1f   :  { %40 = vsyncpa [#allocation27], 0 }
  0x20   :  { %41 = vsyncpa [#allocation4], 0 }
  0x21   :  { %43 = vsyncpa [#allocation4 + $0x1], 0  ;;  %s5043_s4 = smov 0   ;;  %s5045_s30 = smov 0  }
  0x22   :  { %s5047_s24 = smov 0   ;;  %s5049_s25 = smov 0  }
  0x23 LB: > { %5944 = sst [smem:[#allocation41_spill]] %s4875_s4  ;;  %s4889_s5 = smov [#allocation7]   ;;  %s4887_s25 = sphi %s5049_s25, %s6009_s25   ;;  %s4883_s24 = sphi %s5047_s24, %s6008_s24   ;;  %s4879_s30 = sphi %s5045_s30, %s6007_s30   ;;  %s4875_s4 = sphi %s5043_s4, %s6006_s4  }
  0x24   : > { %s585_s1 = sshll.u32 %s4889_s5, 4  ;;  %s5064_s26 = sadd.s32 4294967295, %s4887_s25   ;;  %s5069_s1 = int_to_ptr.vmem [resolvable:$true] %s585_s1 }
  0x25   : > { %5945 = sst [smem:[#allocation42_spill]] %s5064_s26  ;;  %p3677_p0 = scmp.ge.s32.totalorder %s4887_s25, 1 }
  0x26   : > { %p5908_p1 = scmp.eq.s32.totalorder %s5064_s26, 0  ;;  %p573_p2 = scmp.lt.s32.totalorder %s4887_s25, 3 }
  0x27   : > { %s4890_s6 = smov [#allocation8]   ;;  %s4891_s28 = smov [#allocation11]  }
  0x28   : > { %p5071_p3 = pnand %p3677_p0, %p573_p2  ;;  %s598_s27 = sshll.u32 %s4890_s6, 4  ;;  %s5084_s27 = int_to_ptr.vmem [resolvable:$true] %s598_s27 }
  0x29   : > { %s622_s29 = sshll.u32 %s4891_s28, 4  ;;  %s5949_s5 = sld [smem:[#allocation46_spill]]  ;;  %s5086_s29 = int_to_ptr.vmem [resolvable:$true] %s622_s29 }
  0x2a   : > { %s5946_s2 = scalar_select %p5071_p3, 1, 0 }
  0x2b   : > { %p4115_p5 = pneg %p5071_p3 }
  0x2c   : > { %5947 = sst [smem:[#allocation43_spill]] %s5946_s2 }
  0x2d   : > { %p5080_p6 = pnand %p4115_p5, %p5908_p1 }
  0x2f   : > { %s4305_s23 = scalar_lea.hbm %s5949_s5, 512  ;;  %p5096_p8 = pneg %p5080_p6 }
  0x30   : > { %p4306_p7 = scmp.ne.s32.totalorder %s5949_s5, %s4305_s23  ;;  %p4312_p11 = scmp.lt.u32.totalorder %s4305_s23, %s5949_s5 }
  0x32   : > { %p4308_p9 = pnand %p5096_p8, %p4306_p7 }
  0x34   : > { %p4309_p10 = pneg %p4308_p9 }
  0x36   : > { %p4314_p12 = pnand %p4312_p11, %p4309_p10 }
  0x38   : > { %4317 = shalt.err (!%p4314_p12)
}
  0x39   : > { %s4318_s21 = scalar_lea.vmem %s5069_s1, 512  ;;  %p4326_p5 = scmp.lt.s32.totalorder %s5069_s1, %s5069_s1 }
  0x3a   : > { %p4319_p13 = scmp.ne.s32.totalorder %s5069_s1, %s4318_s21  ;;  %p4327_p4 = scmp.lt.s32.totalorder %s4318_s21, %s4318_s21 }
  0x3c   : > { %p4321_p0 = pnand %p4319_p13, %p5096_p8  ;;  %p4328_p7 = por %p4327_p4, %p4326_p5 }
  0x3e   : > { %p4322_p2 = pneg %p4321_p0 }
  0x40   : > { %p4329_p9 = pnand %p4328_p7, %p4322_p2 }
  0x42   : > { %4332 = shalt.err (!%p4329_p9)
}
  0x43   : > { %s5910_s22 = smov 128   ;;  %s5912_s20 = smov 8  }
  0x44   : > { %4118 = dma.hbm_to_vmem [thread:$0]  (!%p5080_p6), %s5949_s5, 512, %s5069_s1, [#allocation6], %s5910_s22, %s5910_s22, %s5912_s20  }
  0x45   : > { %s5951_s18 = sld [smem:[#allocation47_spill]] }
  0x4b   : > { %s4333_s21 = scalar_lea.hbm %s5951_s18, 512 }
  0x4c   : > { %p4334_p4 = scmp.ne.s32.totalorder %s5951_s18, %s4333_s21  ;;  %p4340_p12 = scmp.lt.u32.totalorder %s4333_s21, %s5951_s18 }
  0x4e   : > { %p4336_p10 = pnand %p4334_p4, %p5096_p8 }
  0x50   : > { %p4337_p11 = pneg %p4336_p10 }
  0x52   : > { %p4342_p13 = pnand %p4340_p12, %p4337_p11 }
  0x54   : > { %4345 = shalt.err (!%p4342_p13)
}
  0x55   : > { %s4346_s1 = scalar_lea.vmem %s5084_s27, 512  ;;  %p4354_p7 = scmp.lt.s32.totalorder %s5084_s27, %s5084_s27 }
  0x56   : > { %p4347_p0 = scmp.ne.s32.totalorder %s5084_s27, %s4346_s1  ;;  %p4355_p9 = scmp.lt.s32.totalorder %s4346_s1, %s4346_s1 }
  0x58   : > { %p4349_p2 = pnand %p4347_p0, %p5096_p8  ;;  %p4356_p4 = por %p4355_p9, %p4354_p7 }
  0x5a   : > { %p4350_p5 = pneg %p4349_p2 }
  0x5c   : > { %p4357_p10 = pnand %p4356_p4, %p4350_p5 }
  0x5e   : > { %4360 = shalt.err (!%p4357_p10)
}
  0x5f   : > { %4121 = dma.hbm_to_vmem [thread:$0]  (!%p5080_p6), %s5951_s18, 512, %s5084_s27, [#allocation9], %s5910_s22, %s5910_s22, %s5912_s20  }
  0x60   : > { %s5952_s23 = sld [smem:[#allocation49_spill]] }
  0x66   : > { %s4361_s3 = scalar_lea.hbm %s5952_s23, 512 }
  0x67   : > { %p4362_p11 = scmp.ne.s32.totalorder %s5952_s23, %s4361_s3  ;;  %p4368_p0 = scmp.lt.u32.totalorder %s4361_s3, %s5952_s23 }
  0x69   : > { %p4364_p12 = pnand %p4362_p11, %p5096_p8 }
  0x6b   : > { %p4365_p13 = pneg %p4364_p12 }
  0x6d   : > { %p4370_p2 = pnand %p4368_p0, %p4365_p13 }
  0x6f   : > { %4373 = shalt.err (!%p4370_p2)
}
  0x70   : > { %s4374_s27 = scalar_lea.vmem %s5086_s29, 512  ;;  %p4382_p4 = scmp.lt.s32.totalorder %s5086_s29, %s5086_s29 }
  0x71   : > { %p4375_p5 = scmp.ne.s32.totalorder %s5086_s29, %s4374_s27  ;;  %p4383_p10 = scmp.lt.s32.totalorder %s4374_s27, %s4374_s27 }
  0x73   : > { %p4377_p7 = pnand %p4375_p5, %p5096_p8  ;;  %p4384_p11 = por %p4383_p10, %p4382_p4 }
  0x75   : > { %p4378_p9 = pneg %p4377_p7 }
  0x77   : > { %p4385_p12 = pnand %p4384_p11, %p4378_p9 }
  0x79   : > { %4388 = shalt.err (!%p4385_p12)
}
  0x7a   : > { %4127 = dma.hbm_to_vmem [thread:$0]  (!%p5080_p6), %s5952_s23, 512, %s5086_s29, [#allocation12], %s5910_s22, %s5910_s22, %s5912_s20  }
  0x7b   : > { %s4894_s26 = smov [#allocation14]   ;;  %s4895_s3 = smov [#allocation17]  }
  0x7c   : > { %s647_s2 = sshll.u32 %s4894_s26, 4  ;;  %s672_s0 = sshll.u32 %s4895_s3, 4  ;;  %s648_s2 = int_to_ptr.vmem [resolvable:$true] %s647_s2  ;;  %s673_s0 = int_to_ptr.vmem [resolvable:$true] %s672_s0 }
  0x7d   : > { %s5953_s1 = sld [smem:[#allocation51_spill]] }
  0x83   : > { %s4389_s27 = scalar_lea.hbm %s5953_s1, 16 }
  0x84   : > { %p4390_p13 = scmp.ne.s32.totalorder %s5953_s1, %s4389_s27  ;;  %p4396_p5 = scmp.lt.u32.totalorder %s4389_s27, %s5953_s1 }
  0x86   : > { %p4392_p0 = pnand %p4390_p13, %p5096_p8 }
  0x88   : > { %p4393_p2 = pneg %p4392_p0 }
  0x8a   : > { %p4398_p7 = pnand %p4396_p5, %p4393_p2 }
  0x8c   : > { %4401 = shalt.err (!%p4398_p7)
}
  0x8d   : > { %s4402_s29 = scalar_lea.vmem %s648_s2, 16  ;;  %s4409_s17 = scalar_lea.vmem %s648_s2, 32 }
  0x8e   : > { %p4403_p9 = scmp.ne.s32.totalorder %s648_s2, %s4402_s29  ;;  %p4410_p11 = scmp.lt.s32.totalorder %s648_s2, %s648_s2 }
  0x8f   : > { %p4411_p12 = scmp.lt.s32.totalorder %s4409_s17, %s4402_s29 }
  0x90   : > { %p4405_p4 = pnand %p4403_p9, %p5096_p8 }
  0x91   : > { %p4412_p1 = por %p4411_p12, %p4410_p11 }
  0x92   : > { %p4406_p10 = pneg %p4405_p4 }
  0x94   : > { %p4413_p3 = pnand %p4412_p1, %p4406_p10 }
  0x96   : > { %4416 = shalt.err (!%p4413_p3)
}
  0x97   : > { %4133 = dma.hbm_to_vmem [thread:$0]  (!%p5080_p6), %s5953_s1, 16, %s648_s2, [#allocation15]  }
  0x98   : > { %s5954_s10 = sld [smem:[#allocation54_spill]] }
  0x9e   : > { %s4417_s3 = scalar_lea.hbm %s5954_s10, 16 }
  0x9f   : > { %p4418_p13 = scmp.ne.s32.totalorder %s5954_s10, %s4417_s3  ;;  %p4424_p3 = scmp.lt.u32.totalorder %s4417_s3, %s5954_s10 }
  0xa1   : > { %p4420_p0 = pnand %p4418_p13, %p5096_p8 }
  0xa3   : > { %p4421_p1 = pneg %p4420_p0 }
  0xa5   : > { %p4426_p2 = pnand %p4424_p3, %p4421_p1 }
  0xa7   : > { %4429 = shalt.err (!%p4426_p2)
}
  0xa8   : > { %s4430_s29 = scalar_lea.vmem %s673_s0, 16  ;;  %s4437_s2 = scalar_lea.vmem %s673_s0, 32 }
  0xa9   : > { %p4431_p5 = scmp.ne.s32.totalorder %s673_s0, %s4430_s29  ;;  %p4438_p4 = scmp.lt.s32.totalorder %s673_s0, %s673_s0 }
  0xaa   : > { %p4439_p10 = scmp.lt.s32.totalorder %s4437_s2, %s4430_s29 }
  0xab   : > { %p4433_p7 = pnand %p4431_p5, %p5096_p8 }
  0xac   : > { %p4440_p11 = por %p4439_p10, %p4438_p4 }
  0xad   : > { %p4434_p9 = pneg %p4433_p7 }
  0xaf   : > { %p4441_p12 = pnand %p4440_p11, %p4434_p9 }
  0xb1   : > { %4444 = shalt.err (!%p4441_p12)
}
  0xb2   : > { %4139 = dma.hbm_to_vmem [thread:$0]  (!%p5080_p6), %s5954_s10, 16, %s673_s0, [#allocation18]  }
  0xb3   : > { %s4896_s5 = smov [#allocation20]   ;;  %s4897_s26 = smov [#allocation23]  }
  0xb4   : > { %s696_s4 = sshll.u32 %s4896_s5, 4  ;;  %s720_s3 = sshll.u32 %s4897_s26, 4  ;;  %s697_s4 = int_to_ptr.vmem [resolvable:$true] %s696_s4  ;;  %s721_s3 = int_to_ptr.vmem [resolvable:$true] %s720_s3 }
  0xb5   : > { %s5955_s12 = sld [smem:[#allocation56_spill]] }
  0xbb   : > { %s4445_s27 = scalar_lea.hbm %s5955_s12, 16 }
  0xbc   : > { %p4446_p13 = scmp.ne.s32.totalorder %s5955_s12, %s4445_s27  ;;  %p4452_p3 = scmp.lt.u32.totalorder %s4445_s27, %s5955_s12 }
  0xbe   : > { %p4448_p0 = pnand %p4446_p13, %p5096_p8 }
  0xc0   : > { %p4449_p1 = pneg %p4448_p0 }
  0xc2   : > { %p4454_p2 = pnand %p4452_p3, %p4449_p1 }
  0xc4   : > { %4457 = shalt.err (!%p4454_p2)
}
  0xc5   : > { %s4458_s0 = scalar_lea.vmem %s697_s4, 16  ;;  %s4465_s18 = scalar_lea.vmem %s697_s4, 32 }
  0xc6   : > { %p4459_p5 = scmp.ne.s32.totalorder %s697_s4, %s4458_s0  ;;  %p4466_p4 = scmp.lt.s32.totalorder %s697_s4, %s697_s4 }
  0xc7   : > { %p4467_p10 = scmp.lt.s32.totalorder %s4465_s18, %s4458_s0 }
  0xc8   : > { %p4461_p7 = pnand %p4459_p5, %p5096_p8 }
  0xc9   : > { %p4468_p11 = por %p4467_p10, %p4466_p4 }
  0xca   : > { %p4462_p9 = pneg %p4461_p7 }
  0xcc   : > { %p4469_p12 = pnand %p4468_p11, %p4462_p9 }
  0xce   : > { %4472 = shalt.err (!%p4469_p12)
}
  0xcf   : > { %4145 = dma.hbm_to_vmem [thread:$0]  (!%p5080_p6), %s5955_s12, 16, %s697_s4, [#allocation21]  }
  0xd0   : > { %s4473_s27 = scalar_lea.hbm %s5881_s14, 16 }
  0xd1   : > { %p4474_p13 = scmp.ne.s32.totalorder %s5881_s14, %s4473_s27  ;;  %p4480_p3 = scmp.lt.u32.totalorder %s4473_s27, %s5881_s14 }
  0xd3   : > { %p4476_p0 = pnand %p4474_p13, %p5096_p8 }
  0xd5   : > { %p4477_p1 = pneg %p4476_p0 }
  0xd7   : > { %p4482_p2 = pnand %p4480_p3, %p4477_p1 }
  0xd9   : > { %4485 = shalt.err (!%p4482_p2)
}
  0xda   : > { %s4486_s0 = scalar_lea.vmem %s721_s3, 16  ;;  %s4493_s4 = scalar_lea.vmem %s721_s3, 32 }
  0xdb   : > { %p4487_p5 = scmp.ne.s32.totalorder %s721_s3, %s4486_s0  ;;  %p4494_p4 = scmp.lt.s32.totalorder %s721_s3, %s721_s3 }
  0xdc   : > { %p4495_p10 = scmp.lt.s32.totalorder %s4493_s4, %s4486_s0 }
  0xdd   : > { %p4489_p7 = pnand %p4487_p5, %p5096_p8 }
  0xde   : > { %p4496_p11 = por %p4495_p10, %p4494_p4 }
  0xdf   : > { %p4490_p9 = pneg %p4489_p7 }
  0xe1   : > { %p4497_p12 = pnand %p4496_p11, %p4490_p9 }
  0xe3   : > { %4500 = shalt.err (!%p4497_p12)
}
  0xe4   : > { %4151 = dma.hbm_to_vmem [thread:$0]  (!%p5080_p6), %s5881_s14, 16, %s721_s3, [#allocation24]  }
  0xe5   : > { %s4898_s26 = smov [#allocation26]   ;;  %s4899_s21 = smov [#allocation10]  }
  0xe6   : > { %s742_s28 = sshll.u32 %s4898_s26, 4  ;;  %s612_s27 = sshll.u32 %s4899_s21, 4  ;;  %s743_s28 = int_to_ptr.vmem [resolvable:$true] %s742_s28  ;;  %s613_s27 = int_to_ptr.vmem [resolvable:$true] %s612_s27 }
  0xe7   : > { %s4501_s2 = scalar_lea.hbm %s5883_s16, 16 }
  0xe8   : > { %p4502_p13 = scmp.ne.s32.totalorder %s5883_s16, %s4501_s2  ;;  %p4508_p3 = scmp.lt.u32.totalorder %s4501_s2, %s5883_s16 }
  0xea   : > { %p4504_p0 = pnand %p4502_p13, %p5096_p8 }
  0xec   : > { %p4505_p1 = pneg %p4504_p0 }
  0xee   : > { %p4510_p2 = pnand %p4508_p3, %p4505_p1 }
  0xf0   : > { %4513 = shalt.err (!%p4510_p2)
}
  0xf1   : > { %s4514_s3 = scalar_lea.vmem %s743_s28, 16  ;;  %s4521_s5 = scalar_lea.vmem %s743_s28, 32 }
  0xf2   : > { %p4515_p5 = scmp.ne.s32.totalorder %s743_s28, %s4514_s3  ;;  %p4522_p4 = scmp.lt.s32.totalorder %s743_s28, %s743_s28 }
  0xf3   : > { %p4523_p10 = scmp.lt.s32.totalorder %s4521_s5, %s4514_s3 }
  0xf4   : > { %p4517_p7 = pnand %p4515_p5, %p5096_p8 }
  0xf5   : > { %p4524_p11 = por %p4523_p10, %p4522_p4 }
  0xf6   : > { %p4518_p9 = pneg %p4517_p7 }
  0xf8   : > { %p4525_p12 = pnand %p4524_p11, %p4518_p9 }
  0xfa   : > { %4528 = shalt.err (!%p4525_p12)
}
  0xfb   : > { %4157 = dma.hbm_to_vmem [thread:$0]  (!%p5080_p6), %s5883_s16, 16, %s743_s28, [#allocation27]  }
  0xfc   : > { %s5956_s2 = sld [smem:[#allocation48_spill]] }
 0x102   : > { %s4529_s17 = scalar_lea.hbm %s5956_s2, 16 }
 0x103   : > { %p4530_p13 = scmp.ne.s32.totalorder %s5956_s2, %s4529_s17  ;;  %p4536_p3 = scmp.lt.u32.totalorder %s4529_s17, %s5956_s2 }
 0x105   : > { %p4532_p0 = pnand %p4530_p13, %p5096_p8 }
 0x107   : > { %p4533_p1 = pneg %p4532_p0 }
 0x109   : > { %p4538_p2 = pnand %p4536_p3, %p4533_p1 }
 0x10b   : > { %4541 = shalt.err (!%p4538_p2)
}
 0x10c   : > { %s4542_s5 = scalar_lea.vmem %s613_s27, 16  ;;  %s4549_s28 = scalar_lea.vmem %s613_s27, 32 }
 0x10d   : > { %p4543_p5 = scmp.ne.s32.totalorder %s613_s27, %s4542_s5  ;;  %p4550_p4 = scmp.lt.s32.totalorder %s613_s27, %s613_s27 }
 0x10e   : > { %p4551_p10 = scmp.lt.s32.totalorder %s4549_s28, %s4542_s5 }
 0x10f   : > { %p4545_p7 = pnand %p4543_p5, %p5096_p8 }
 0x110   : > { %p4552_p11 = por %p4551_p10, %p4550_p4 }
 0x111   : > { %p4546_p9 = pneg %p4545_p7 }
 0x113   : > { %p4553_p12 = pnand %p4552_p11, %p4546_p9 }
 0x115   : > { %4556 = shalt.err (!%p4553_p12)
}
 0x116   : > { %4124 = dma.hbm_to_vmem [thread:$0]  (!%p5080_p6), %s5956_s2, 16, %s613_s27, [#allocation9]  }
 0x117   : > { %s4900_s9 = smov [#allocation13]   ;;  %s4901_s17 = smov [#allocation16]  }
 0x118   : > { %s636_s29 = sshll.u32 %s4900_s9, 4  ;;  %s658_s0 = sshll.u32 %s4901_s17, 4  ;;  %s637_s29 = int_to_ptr.vmem [resolvable:$true] %s636_s29  ;;  %s659_s0 = int_to_ptr.vmem [resolvable:$true] %s658_s0 }
 0x119   : > { %s5957_s3 = sld [smem:[#allocation50_spill]] }
 0x11f   : > { %s4557_s22 = scalar_lea.hbm %s5957_s3, 16 }
 0x120   : > { %p4558_p13 = scmp.ne.s32.totalorder %s5957_s3, %s4557_s22  ;;  %p4564_p3 = scmp.lt.u32.totalorder %s4557_s22, %s5957_s3 }
 0x122   : > { %p4560_p0 = pnand %p4558_p13, %p5096_p8 }
 0x124   : > { %p4561_p1 = pneg %p4560_p0 }
 0x126   : > { %p4566_p2 = pnand %p4564_p3, %p4561_p1 }
 0x128   : > { %4569 = shalt.err (!%p4566_p2)
}
 0x129   : > { %s4570_s27 = scalar_lea.vmem %s637_s29, 16  ;;  %s4577_s21 = scalar_lea.vmem %s637_s29, 32 }
 0x12a   : > { %p4571_p5 = scmp.ne.s32.totalorder %s637_s29, %s4570_s27  ;;  %p4578_p4 = scmp.lt.s32.totalorder %s637_s29, %s637_s29 }
 0x12b   : > { %p4579_p10 = scmp.lt.s32.totalorder %s4577_s21, %s4570_s27 }
 0x12c   : > { %p4573_p7 = pnand %p4571_p5, %p5096_p8 }
 0x12d   : > { %p4580_p11 = por %p4579_p10, %p4578_p4 }
 0x12e   : > { %p4574_p9 = pneg %p4573_p7 }
 0x130   : > { %p4581_p12 = pnand %p4580_p11, %p4574_p9 }
 0x132   : > { %4584 = shalt.err (!%p4581_p12)
}
 0x133   : > { %4130 = dma.hbm_to_vmem [thread:$0]  (!%p5080_p6), %s5957_s3, 16, %s637_s29, [#allocation12]  }
 0x134   : > { %s5958_s8 = sld [smem:[#allocation52_spill]] }
 0x13a   : > { %s4585_s4 = scalar_lea.hbm %s5958_s8, 16 }
 0x13b   : > { %p4586_p13 = scmp.ne.s32.totalorder %s5958_s8, %s4585_s4  ;;  %p4592_p3 = scmp.lt.u32.totalorder %s4585_s4, %s5958_s8 }
 0x13d   : > { %p4588_p0 = pnand %p4586_p13, %p5096_p8 }
 0x13f   : > { %p4589_p1 = pneg %p4588_p0 }
 0x141   : > { %p4594_p2 = pnand %p4592_p3, %p4589_p1 }
 0x143   : > { %4597 = shalt.err (!%p4594_p2)
}
 0x144   : > { %s4598_s27 = scalar_lea.vmem %s659_s0, 16  ;;  %s4605_s29 = scalar_lea.vmem %s659_s0, 32 }
 0x145   : > { %p4599_p5 = scmp.ne.s32.totalorder %s659_s0, %s4598_s27  ;;  %p4606_p4 = scmp.lt.s32.totalorder %s659_s0, %s659_s0 }
 0x146   : > { %p4607_p10 = scmp.lt.s32.totalorder %s4605_s29, %s4598_s27 }
 0x147   : > { %p4601_p7 = pnand %p4599_p5, %p5096_p8 }
 0x148   : > { %p4608_p11 = por %p4607_p10, %p4606_p4 }
 0x149   : > { %p4602_p9 = pneg %p4601_p7 }
 0x14b   : > { %p4609_p12 = pnand %p4608_p11, %p4602_p9 }
 0x14d   : > { %4612 = shalt.err (!%p4609_p12)
}
 0x14e   : > { %4136 = dma.hbm_to_vmem [thread:$0]  (!%p5080_p6), %s5958_s8, 16, %s659_s0, [#allocation15]  }
 0x14f   : > { %s4902_s17 = smov [#allocation19]   ;;  %s4903_s20 = smov [#allocation22]  }
 0x150   : > { %s682_s22 = sshll.u32 %s4902_s17, 4  ;;  %s706_s4 = sshll.u32 %s4903_s20, 4  ;;  %s683_s22 = int_to_ptr.vmem [resolvable:$true] %s682_s22  ;;  %s707_s4 = int_to_ptr.vmem [resolvable:$true] %s706_s4 }
 0x151   : > { %s5959_s11 = sld [smem:[#allocation55_spill]] }
 0x157   : > { %s4613_s28 = scalar_lea.hbm %s5959_s11, 512 }
 0x158   : > { %p4614_p13 = scmp.ne.s32.totalorder %s5959_s11, %s4613_s28  ;;  %p4620_p3 = scmp.lt.u32.totalorder %s4613_s28, %s5959_s11 }
 0x15a   : > { %p4616_p0 = pnand %p4614_p13, %p5096_p8 }
 0x15c   : > { %p4617_p1 = pneg %p4616_p0 }
 0x15e   : > { %p4622_p2 = pnand %p4620_p3, %p4617_p1 }
 0x160   : > { %4625 = shalt.err (!%p4622_p2)
}
 0x161   : > { %s4626_s0 = scalar_lea.vmem %s683_s22, 512  ;;  %p4634_p4 = scmp.lt.s32.totalorder %s683_s22, %s683_s22 }
 0x162   : > { %p4627_p5 = scmp.ne.s32.totalorder %s683_s22, %s4626_s0  ;;  %p4635_p10 = scmp.lt.s32.totalorder %s4626_s0, %s4626_s0 }
 0x164   : > { %p4629_p7 = pnand %p4627_p5, %p5096_p8  ;;  %p4636_p11 = por %p4635_p10, %p4634_p4 }
 0x166   : > { %p4630_p9 = pneg %p4629_p7 }
 0x168   : > { %p4637_p12 = pnand %p4636_p11, %p4630_p9 }
 0x16a   : > { %4640 = shalt.err (!%p4637_p12)
}
 0x16b   : > { %s5960_s9 = smov 8   ;;  %s5961_s17 = smov 128  }
 0x16c   : > { %4142 = dma.hbm_to_vmem [thread:$0]  (!%p5080_p6), %s5959_s11, 512, %s683_s22, [#allocation18], %s5961_s17, %s5961_s17, %s5960_s9  }
 0x16d   : > { %s5962_s13 = sld [smem:[#allocation57_spill]] }
 0x173   : > { %s4641_s26 = scalar_lea.hbm %s5962_s13, 512 }
 0x174   : > { %p4642_p13 = scmp.ne.s32.totalorder %s5962_s13, %s4641_s26  ;;  %p4648_p3 = scmp.lt.u32.totalorder %s4641_s26, %s5962_s13 }
 0x176   : > { %p4644_p0 = pnand %p4642_p13, %p5096_p8 }
 0x178   : > { %p4645_p1 = pneg %p4644_p0 }
 0x17a   : > { %p4650_p2 = pnand %p4648_p3, %p4645_p1 }
 0x17c   : > { %4653 = shalt.err (!%p4650_p2)
}
 0x17d   : > { %s4654_s20 = scalar_lea.vmem %s707_s4, 512  ;;  %p4662_p4 = scmp.lt.s32.totalorder %s707_s4, %s707_s4 }
 0x17e   : > { %p4655_p5 = scmp.ne.s32.totalorder %s707_s4, %s4654_s20  ;;  %p4663_p10 = scmp.lt.s32.totalorder %s4654_s20, %s4654_s20 }
 0x180   : > { %p4657_p7 = pnand %p4655_p5, %p5096_p8  ;;  %p4664_p11 = por %p4663_p10, %p4662_p4 }
 0x182   : > { %p4658_p9 = pneg %p4657_p7 }
 0x184   : > { %p4665_p12 = pnand %p4664_p11, %p4658_p9 }
 0x186   : > { %4668 = shalt.err (!%p4665_p12)
}
 0x187   : > { %4148 = dma.hbm_to_vmem [thread:$0]  (!%p5080_p6), %s5962_s13, 512, %s707_s4, [#allocation21], %s5961_s17, %s5961_s17, %s5960_s9  }
 0x188   : > { %s4904_s5 = smov [#allocation25]   ;;  %s4905_s26 = smov [#allocation28]  }
 0x189   : > { %s731_s28 = sshll.u32 %s4904_s5, 4  ;;  %s758_s27 = sshll.u32 %s4905_s26, 4  ;;  %s732_s28 = int_to_ptr.vmem [resolvable:$true] %s731_s28  ;;  %s759_s27 = int_to_ptr.vmem [resolvable:$true] %s758_s27 }
 0x18a   : > { %s4669_s0 = scalar_lea.hbm %s5882_s15, 16 }
 0x18b   : > { %p4670_p13 = scmp.ne.s32.totalorder %s5882_s15, %s4669_s0  ;;  %p4676_p3 = scmp.lt.u32.totalorder %s4669_s0, %s5882_s15 }
 0x18d   : > { %p4672_p0 = pnand %p4670_p13, %p5096_p8 }
 0x18f   : > { %p4673_p1 = pneg %p4672_p0 }
 0x191   : > { %p4678_p2 = pnand %p4676_p3, %p4673_p1 }
 0x193   : > { %4681 = shalt.err (!%p4678_p2)
}
 0x194   : > { %s4682_s4 = scalar_lea.vmem %s732_s28, 16  ;;  %s4689_s18 = scalar_lea.vmem %s732_s28, 32 }
 0x195   : > { %p4683_p5 = scmp.ne.s32.totalorder %s732_s28, %s4682_s4  ;;  %p4690_p4 = scmp.lt.s32.totalorder %s732_s28, %s732_s28 }
 0x196   : > { %p4691_p10 = scmp.lt.s32.totalorder %s4689_s18, %s4682_s4 }
 0x197   : > { %p4685_p7 = pnand %p4683_p5, %p5096_p8 }
 0x198   : > { %p4692_p11 = por %p4691_p10, %p4690_p4 }
 0x199   : > { %p4686_p9 = pneg %p4685_p7 }
 0x19b   : > { %p4693_p12 = pnand %p4692_p11, %p4686_p9 }
 0x19d   : > { %4696 = shalt.err (!%p4693_p12)
}
 0x19e   : > { %4154 = dma.hbm_to_vmem [thread:$0]  (!%p5080_p6), %s5882_s15, 16, %s732_s28, [#allocation24]  }
 0x19f   : > { %s4697_s29 = scalar_lea.hbm %s5886_s19, 512 }
 0x1a0   : > { %p4698_p13 = scmp.ne.s32.totalorder %s5886_s19, %s4697_s29  ;;  %p4704_p3 = scmp.lt.u32.totalorder %s4697_s29, %s5886_s19 }
 0x1a2   : > { %p4700_p0 = pnand %p4698_p13, %p5096_p8 }
 0x1a4   : > { %p4701_p1 = pneg %p4700_p0 }
 0x1a6   : > { %p4706_p2 = pnand %p4704_p3, %p4701_p1 }
 0x1a8   : > { %4709 = shalt.err (!%p4706_p2)
}
 0x1a9   : > { %s4710_s4 = scalar_lea.vmem %s759_s27, 512  ;;  %p4718_p4 = scmp.lt.s32.totalorder %s759_s27, %s759_s27 }
 0x1aa   : > { %p4711_p5 = scmp.ne.s32.totalorder %s759_s27, %s4710_s4  ;;  %p4719_p10 = scmp.lt.s32.totalorder %s4710_s4, %s4710_s4 }
 0x1ac   : > { %p4713_p7 = pnand %p4711_p5, %p5096_p8  ;;  %p4720_p11 = por %p4719_p10, %p4718_p4 }
 0x1ae   : > { %p4714_p9 = pneg %p4713_p7 }
 0x1b0   : > { %p4721_p12 = pnand %p4720_p11, %p4714_p9 }
 0x1b2   : > { %4724 = shalt.err (!%p4721_p12)
}
 0x1b3   : > { %s5963_s6 = sld [smem:[#allocation41_spill]]  ;;  %s5964_s1 = sld [smem:[#allocation42_spill]] }
 0x1b4   : > { %4160 = dma.hbm_to_vmem [thread:$0]  (!%p5080_p6), %s5886_s19, 512, %s759_s27, [#allocation27], %s5961_s17, %s5961_s17, %s5960_s9  }
 0x1b5   : > { %s3676_s7 = sadd.s32 4294967294, %s4887_s25   ;;  %s5399_s5 = sadd.s32 1, %s4887_s25  }
 0x1b6   : > { %s56_s2 = sadd.s32 1, %s4883_s24  ;;  %s53_s26 = ssub.s32 %s4887_s25, %s5399_s5 }
 0x1b7   : > { %p63_p8 = scmp.ne.s32.totalorder %s4883_s24, %s4879_s30  ;;  %p54_p13 = scmp.eq.s32.totalorder %s53_s26, 0 }
 0x1b8   : > { %p64_p0 = scmp.eq.s32.totalorder %s4887_s25, 0  ;;  %p566_p9 = scmp.eq.s32.totalorder %s3676_s7, 1 }
 0x1b9   : > { %p69_p1 = scmp.ne.s32.totalorder %s4879_s30, %s5963_s6  ;;  %p560_p3 = scmp.eq.s32.totalorder %s5964_s1, 1 }
 0x1ba   : > { %s5411_s29 = scalar_select %p54_p13, %s4883_s24, %s56_s2  }
 0x1bb   : > { %p65_p2 = por %p64_p0, %p63_p8  ;;  %p5965_p5 = scmp.eq.s32.totalorder %s5964_s1, 0 }
 0x1bc   : > { %p5419_p6 = por %p560_p3, %p63_p8  ;;  %p4187_p4 = scmp.lt.s32.totalorder %s4887_s25, 2 }
 0x1bd   : > { %p5415_p7 = por %p5965_p5, %p69_p1  ;;  %s781_s17 = sand.u32 1, %s4883_s24  }
 0x1be   : > { %s5967_s9 = scalar_select %p5419_p6, 1, 0 }
 0x1bf   : > { %s5966_s21 = scalar_select %p5415_p7, 1, 0 }
 0x1c0   : > { %p5425_p10 = por %p566_p9, %p69_p1  ;;  %s5429_s0 = sshll.u32 %s781_s17, 3 }
 0x1c1   : > { %s3695_s20 = sshll.u32 %s4887_s25, 7  ;;  %s5969_s28 = sld [smem:[#allocation44_spill]] }
 0x1c2   : > { %s5968_s27 = scalar_select %p5425_p10, 1, 0 }
 0x1c3   : > { %s785_s6 = scalar_lea.vmem [#allocation2], %s5429_s0  ;;  %p5438_p11 = pnand %p4187_p4, %p65_p2 }
 0x1c4   : > { %s792_s1 = sshll.u32 %s785_s6, 4  ;;  %s5971_s3 = sld [smem:[#allocation45_spill]]  ;;  %s5442_s1 = int_to_ptr.vmem [resolvable:$true] %s792_s1 }
 0x1c5   : > { %s782_s4 = scalar_lea.sflag [#allocation3], %s781_s17  ;;  %p4727_p8 = pneg %p5438_p11 }
 0x1c7   : > { %s5435_s18 = scalar_lea.hbm %s5969_s28, %s3695_s20  ;;  %s4730_s11 = scalar_lea.hbm %s5969_s28, 256 }
 0x1c8   : > { %s4725_s8 = scalar_lea.hbm %s5435_s18, 128  ;;  %p4731_p1 = scmp.lt.u32.totalorder %s5435_s18, %s5969_s28 }
 0x1c9   : > { %p4726_p12 = scmp.ne.s32.totalorder %s5435_s18, %s4725_s8  ;;  %p4732_p3 = scmp.lt.u32.totalorder %s4730_s11, %s4725_s8 }
 0x1ca   : > { %s5447_s22 = scalar_lea.hbm %s5971_s3, %s3695_s20  ;;  %p4734_p5 = scmp.lt.u32.totalorder %s4725_s8, %s5435_s18 }
 0x1cb   : > { %p4728_p13 = pnand %p4727_p8, %p4726_p12  ;;  %p4733_p2 = por %p4732_p3, %p4731_p1 }
 0x1cd   : > { %p4729_p0 = pneg %p4728_p13  ;;  %p4735_p9 = por %p4734_p5, %p4733_p2 }
 0x1cf   : > { %p4736_p4 = pnand %p4735_p9, %p4729_p0 }
 0x1d1   : > { %4739 = shalt.err (!%p4736_p4)
}
 0x1d2   : > { %s4740_s17 = scalar_lea.vmem %s5442_s1, 128  ;;  %s4906_s10 = smov [#allocation2]  }
 0x1d3   : > { %p4741_p12 = scmp.ne.s32.totalorder %s5442_s1, %s4740_s17  ;;  %s4745_s20 = sshll.u32 %s4906_s10, 4  ;;  %s4746_s20 = int_to_ptr.vmem [resolvable:$false] %s4745_s20 }
 0x1d4   : > { %s4747_s12 = scalar_lea.vmem %s4746_s20, 256  ;;  %p4748_p6 = scmp.lt.s32.totalorder %s5442_s1, %s4746_s20 }
 0x1d5   : > { %p4743_p13 = pnand %p4741_p12, %p4727_p8  ;;  %p4749_p1 = scmp.lt.s32.totalorder %s4747_s12, %s4740_s17 }
 0x1d7   : > { %p4744_p10 = pneg %p4743_p13  ;;  %p4750_p3 = por %p4749_p1, %p4748_p6 }
 0x1d9   : > { %p4751_p2 = pnand %p4750_p3, %p4744_p10 }
 0x1db   : > { %4754 = shalt.err (!%p4751_p2)
}
 0x1dc   : > { %4164 = dma.hbm_to_vmem [thread:$0]  (!%p5438_p11), %s5435_s18, 128, %s5442_s1, %s782_s4  }
 0x1dd   : > { %s799_s8 = sand.u32 1, %s4887_s25   ;;  %s803_s11 = scalar_lea.vmem [#allocation5], %s5429_s0 }
 0x1de   : > { %s810_s13 = sshll.u32 %s803_s11, 4  ;;  %s800_s2 = scalar_lea.sflag [#allocation6], %s799_s8  ;;  %s811_s13 = int_to_ptr.vmem [resolvable:$true] %s810_s13 }
 0x1df   : > { %s4755_s26 = scalar_lea.hbm %s5447_s22, 128  ;;  %s4760_s10 = scalar_lea.hbm %s5971_s3, 256 }
 0x1e0   : > { %p4756_p6 = scmp.ne.s32.totalorder %s5447_s22, %s4755_s26  ;;  %p4761_p5 = scmp.lt.u32.totalorder %s5447_s22, %s5971_s3 }
 0x1e1   : > { %p4762_p9 = scmp.lt.u32.totalorder %s4760_s10, %s4755_s26  ;;  %p4764_p12 = scmp.lt.u32.totalorder %s4755_s26, %s5447_s22 }
 0x1e2   : > { %p4758_p10 = pnand %p4756_p6, %p4727_p8 }
 0x1e3   : > { %p4763_p4 = por %p4762_p9, %p4761_p5 }
 0x1e4   : > { %p4759_p0 = pneg %p4758_p10 }
 0x1e5   : > { %p4765_p13 = por %p4764_p12, %p4763_p4 }
 0x1e7   : > { %p4766_p1 = pnand %p4765_p13, %p4759_p0 }
 0x1e9   : > { %4769 = shalt.err (!%p4766_p1)
}
 0x1ea   : > { %s4770_s0 = scalar_lea.vmem %s811_s13, 128  ;;  %s4907_s18 = smov [#allocation5]  }
 0x1eb   : > { %p4771_p3 = scmp.ne.s32.totalorder %s811_s13, %s4770_s0  ;;  %s4775_s1 = sshll.u32 %s4907_s18, 4  ;;  %s4776_s1 = int_to_ptr.vmem [resolvable:$false] %s4775_s1 }
 0x1ec   : > { %s4777_s4 = scalar_lea.vmem %s4776_s1, 256  ;;  %p4778_p10 = scmp.lt.s32.totalorder %s811_s13, %s4776_s1 }
 0x1ed   : > { %p4773_p2 = pnand %p4771_p3, %p4727_p8  ;;  %p4779_p7 = scmp.lt.s32.totalorder %s4777_s4, %s4770_s0 }
 0x1ef   : > { %p4774_p6 = pneg %p4773_p2  ;;  %p4780_p5 = por %p4779_p7, %p4778_p10 }
 0x1f1   : > { %p4781_p9 = pnand %p4780_p5, %p4774_p6 }
 0x1f3   : > { %4784 = shalt.err (!%p4781_p9)
}
 0x1f4   : > { %4167 = dma.hbm_to_vmem [thread:$0]  (!%p5438_p11), %s5447_s22, 128, %s811_s13, %s800_s2  }
 0x1f5   : > { %s5972_s8 = sld [smem:[#allocation43_spill]] }
 0x1fb   : > { %p5973_p0 = scmp.ne.s32.totalorder %s5972_s8, 0 }
 0x1fc   : > { %s5498_s11 = sand.u32 (!%p5973_p0), 1, %s4879_s30   ;;  %p5974_p7 = scmp.ne.s32.totalorder (!%p5973_p0), %s5966_s21, 0 }
 0x1fd   : > { %819 = sbr.rel (%p5973_p0) target bundleno = 7079 (0x1ba7), region = 112  ;;  %s5501_s26 = sshll.u32 (!%p5973_p0), %s5498_s11, 3 }
 0x1fe   : > { %s822_s6 = scalar_lea.sflag (!%p5973_p0), [#allocation3], %s5498_s11  ;;  %s825_s17 = scalar_lea.vmem (!%p5973_p0), [#allocation2], %s5501_s26 }
 0x204   : > { %4830 = dma.done.wait (%p5974_p7), %s822_s6, 128  }
 0x205   : > { %4832 = vsyncadd (%p5974_p7), %s822_s6, 4294967168  ;;  %s5975_s7 = sld [smem:[#allocation42_spill]]  ;;  %s834_s2 = scalar_lea.vmem [#allocation5], %s5501_s26 }
 0x20b   : > { %s830_s22 = sand.u32 1, %s5975_s7  }
 0x20c   : > { %s831_s13 = scalar_lea.sflag [#allocation6], %s830_s22 }
 0x20d   : > { %4834 = dma.done.wait (%p5974_p7), %s831_s13, 128  }
 0x20e   : > { %4836 = vsyncadd (%p5974_p7), %s831_s13, 4294967168  ;;  %p5976_p11 = scmp.eq.s32.totalorder %s5975_s7, 0 }
 0x210   : > { %4838 = dma.done.wait (%p5976_p11), [#allocation6], 512   ;;  %p5977_p8 = pmov %p5976_p11 }
 0x212   : > { %4840 = vsyncadd (%p5977_p8), [#allocation6], 4294966784  ;;  %p5978_p4 = pmov %p5977_p8 }
 0x214   : > { %4842 = dma.done.wait (%p5978_p4), [#allocation9], 528   ;;  %p5979_p12 = pmov %p5978_p4 }
 0x215   : > { %p5980_p13 = pmov %p5978_p4 }
 0x216   : > { %4844 = vsyncadd (%p5979_p12), [#allocation9], 4294966768 }
 0x217   : > { %4846 = dma.done.wait (%p5980_p13), [#allocation12], 528   ;;  %p5981_p1 = pmov %p5978_p4 }
 0x219   : > { %4848 = vsyncadd (%p5981_p1), [#allocation12], 4294966768  ;;  %p5982_p3 = pmov %p5981_p1 }
 0x21a   : > { %p5983_p2 = pmov %p5981_p1 }
 0x21b   : > { %4850 = dma.done.wait (%p5982_p3), [#allocation15], 32  }
 0x21c   : > { %4852 = vsyncadd (%p5983_p2), [#allocation15], 4294967264  ;;  %p5984_p6 = pmov %p5981_p1 }
 0x21d   : > { %p5985_p10 = pmov %p5981_p1 }
 0x21e   : > { %4854 = dma.done.wait (%p5984_p6), [#allocation18], 528  }
 0x21f   : > { %4856 = vsyncadd (%p5985_p10), [#allocation18], 4294966768  ;;  %p5986_p5 = pmov %p5981_p1 }
 0x220   : > { %p5987_p9 = pmov %p5981_p1 }
 0x221   : > { %4858 = dma.done.wait (%p5986_p5), [#allocation21], 528  }
 0x222   : > { %4860 = vsyncadd (%p5987_p9), [#allocation21], 4294966768  ;;  %p5988_p0 = pmov %p5981_p1 }
 0x224   : > { %4862 = dma.done.wait (%p5988_p0), [#allocation24], 32   ;;  %p5989_p7 = pmov %p5988_p0 }
 0x225   : > { %p5990_p11 = pmov %p5988_p0 }
 0x226   : > { %4864 = vsyncadd (%p5989_p7), [#allocation24], 4294967264 }
 0x227   : > { %4866 = dma.done.wait (%p5990_p11), [#allocation27], 528   ;;  %p5991_p8 = pmov %p5988_p0 }
 0x228   : > { %v4908_v0 = vmov 0.0|0.0   ;;  %vm4909_vm0 = vmmov 0   ;;  %v4910_v1 = vmov 0.0   ;;  %v964_v2 = vld [vmem:[#allocation8] sm:$0xff]  ;;  %v965_v3 = vld [vmem:[#allocation8 + $0x8] sm:$0xff]  ;;  %v966_v4 = vld [vmem:[#allocation8 + $0x10] sm:$0xff]  ;;  %v1049_v17 = vlaneseq }
 0x229   : > { %4868 = vsyncadd (%p5991_p8), [#allocation27], 4294966768  ;;  %4019 = vmatprep.subr.bf16.mxu0 %v4908_v0  ;;  %3852 = vmatprep.mubr.msk.f32.mxu0 %vm4909_vm0, %v4910_v1  ;;  %v4020_v5 = vpack.c.bf16 %v965_v3, %v964_v2  ;;  %v967_v6 = vld [vmem:[#allocation8 + $0x18] sm:$0xff]  ;;  %v5556_v8 = vld [vmem:[%s825_s17] sm:$0xff]  ;;  %vm975_vm1 = vcmask 261120   ;;  %s4911_s21 = smov 96  }
 0x22a   : > { %3855 = vmatprep.subr.mxu1 %v4910_v1  ;;  %3857 = vmatprep.mubr.msk.f32.mxu1 %vm4909_vm0, %v4910_v1  ;;  %v4023_v7 = vpack.c.bf16 %v967_v6, %v966_v4  ;;  %v3717_v9 = vld [vmem:[#allocation10] ss:$0 sm:$0xff]  ;;  %s4912_s10 = smov 120   ;;  %s4913_s20 = smov 88   ;;  %vm1063_vm2 = vcmask 64512   ;;  %v5585_v18 = vshrl.u32 %v1049_v17, 7 }
 0x22b   : > { %4021 = vmatpush3.bf16.msra.mxu0 %v4020_v5  ;;  %v5587_v19 = vand.u32 127, %v1049_v17  ;;  %v1059_v20 = vld [vmem:[#allocation7] sm:$0xff]  ;;  %v1228_v24 = vld [vmem:[#allocation7 + $0x8] sm:$0xff]  ;;  %s4914_s12 = smov 56   ;;  %s4915_s0 = smov 64   ;;  %v1542_v63 = vld [vmem:[#allocation7 + $0x10] sm:$0xff] }
 0x22c   : > { %4022 = vmatprep.subr.bf16.mxu0 %v4908_v0  ;;  %s5920_s18 = smov 80   ;;  %s4917_s1 = smov 112   ;;  %v1055_v42 = vld [vmem:[#allocation11 + $0x8] sm:$0xff]  ;;  %v1054_v51 = vld [vmem:[#allocation11] sm:$0xff] }
 0x22d   : > { %vm1053_vm3 = vcmp.le.s32.totalorder %v5587_v19, %v5585_v18  ;;  %s5919_s4 = smov 72   ;;  %s5921_s8 = smov 104   ;;  %v1057_v18 = vld [vmem:[#allocation11 + $0x18] sm:$0xff] }
 0x22e   : > { %s4920_s6 = smov 48   ;;  %s4921_s17 = smov 40  }
 0x22f   : > { %4024 = vmatpush3.bf16.msra.mxu0 %v4023_v7  ;;  %s5999_s22 = sld [smem:[#allocation61_spill]]  ;;  %p6002_p12 = scmp.ne.s32.totalorder %s5967_s9, 0 }
 0x230   : > { %3865 = vmatprep.subr.mxu0 %v4910_v1 }
 0x232   : > { %3853 = vmatmul.mubr.msk.f32.vlgmr.msra.gmra.mrb[0].mxu0 %vm975_vm1, %v5556_v8 }
 0x233   : > { %3867 = vmatprep.mubr.msk.f32.mxu0 %vm4909_vm0, %v4910_v1 }
 0x305   : > { %v1045_v10 = vpop.f32.mrb[0].mxu0 }
 0x306   : > { %v5563_v11 = vadd.f32 %v3717_v9, %v1045_v10  ;;  %v3854_v12 = vpop.f32.mrb[1].mxu0 }
 0x308   : > { %1061 = vrot.lane.b32.xlu0 %v5563_v11, %s4911_s21  ;;  %v5568_v13 = vmul.f32 0.35355338, %v5563_v11 }
 0x30a   : > { %1229 = vrot.lane.b32.xlu1 %v5568_v13, %s4912_s10 }
 0x30c   : > { %1231 = vrot.lane.b32.xlu0 %v5563_v11, %s4913_s20 }
 0x37a   : > { %v1062_v14 = vpop.permute.xlu0 %1061 }
 0x37b   : > { %3856 = vmatpush3.xpose.msk.msra.mxu1 %vm1063_vm2, %v1062_v14 }
 0x37c   : > { %3860 = vmatprep.subr.mxu1 %v4910_v1  ;;  %v1230_v16 = vpop.permute.xlu1 %1229 }
 0x37e   : > { %v1232_v15 = vpop.permute.xlu0 %1231  ;;  %3858 = vmatmul.mubr.msk.f32.vlgmr.msra.gmra.mrb[0].mxu1 %vm1063_vm2, %v5568_v13 }
 0x37f   : > { %3866 = vmatpush3.xpose.msk.msra.mxu0 %vm1063_vm2, %v1232_v15  ;;  %3862 = vmatprep.mubr.msk.f32.mxu1 %vm4909_vm0, %v4910_v1 }
 0x380   : > { %3875 = vmatprep.subr.mxu0 %v4910_v1 }
 0x382   : > { %3868 = vmatmul.mubr.msk.f32.vlgmr.msra.gmra.mrb[2].mxu0 %vm1063_vm2, %v1230_v16 }
 0x383   : > { %3877 = vmatprep.mubr.msk.f32.mxu0 %vm4909_vm0, %v4910_v1  ;;  %3876 = vmatpush3.msra.mxu0 %v1055_v42 }
 0x384   : > { %3885 = vmatprep.subr.mxu0 %v4910_v1 }
 0x451   : > { %v1135_v21 = vpop.f32.mrb[0].mxu1 }
 0x452   : > { %v1136_v22 = vadd.f32 %v1135_v21, %v1059_v20  ;;  %v3859_v23 = vpop.f32.mrb[1].mxu1 }
 0x454   : > { %v1139_v25 = vsel %vm1053_vm3, %v1136_v22, -1e+30  ;;  %v1056_v22 = vld [vmem:[#allocation11 + $0x10] sm:$0xff] }
 0x455   : > { %v1303_v26 = vpop.f32.mrb[2].mxu0  ;;  %v1140_v27 = vsel %vm1063_vm2, %v1139_v25, -inf }
 0x456   : > { %v1304_v28 = vadd.f32 %v1303_v26, %v1228_v24  ;;  %1141 = vmax.xlane.f32.xlu1 %v1140_v27  ;;  %v3869_v29 = vpop.f32.mrb[3].mxu0 }
 0x458   : > { %v1307_v30 = vsel %vm1053_vm3, %v1304_v28, -1e+30 }
 0x459   : > { %v1308_v31 = vsel %vm1063_vm2, %v1307_v30, -inf }
 0x45a   : > { %1309 = vmax.xlane.f32.xlu0 %v1308_v31 }
 0x4e3   : > { %v1142_v32 = vpop.xlane.xlu1 %1141 }
 0x4e4   : > { %v1143_v33 = vsub.f32 %v1139_v25, %v1142_v32  ;;  %v1784_v25 = vld [vmem:[#allocation7 + $0x18] sm:$0xff] }
 0x4e6   : > { %v1144_v34 = vmul.f32 1.442695, %v1143_v33 }
 0x4e7   : > { %v1310_v35 = vpop.xlane.xlu0 %1309 }
 0x4e8   : > { %4267 = vpow2.f32 %v1144_v34  ;;  %v1311_v36 = vsub.f32 %v1307_v30, %v1310_v35 }
 0x4ea   : > { %v1312_v37 = vmul.f32 1.442695, %v1311_v36 }
 0x4ec   : > { %4269 = vpow2.f32 %v1312_v37 }
 0x4f2   : > { %v4268_v38 = vpop.eup %4267 }
 0x4f3   : > { %v1146_v39 = vsel %vm1063_vm2, %v4268_v38, 0.0 }
 0x4f4   : > { %1147 = vadd.xlane.f32.xlu0 %v1146_v39 }
 0x4f6   : > { %v4270_v40 = vpop.eup %4269 }
 0x4f7   : > { %v1314_v41 = vsel %vm1063_vm2, %v4270_v40, 0.0 }
 0x4f8   : > { %1315 = vadd.xlane.f32.xlu1 %v1314_v41 }
 0x509   : > { %1319 = vrot.lane.b32.xlu1 %v5563_v11, %s4914_s12  ;;  %s5992_s12 = sld [smem:[#allocation53_spill]] }
 0x50a   : > { %1151 = vrot.lane.b32.xlu0 %v5563_v11, %s4915_s0 }
 0x50d   : > { %1545 = vrot.lane.b32.xlu1 %v5563_v11, %s5920_s18  ;;  %s5998_s18 = sld [smem:[#allocation60_spill]] }
 0x50e   : > { %1543 = vrot.lane.b32.xlu0 %v5568_v13, %s4917_s1 }
 0x581   : > { %v1148_v43 = vpop.xlane.xlu0 %1147 }
 0x582   : > { %4271 = vrcp.f32 %v1148_v43 }
 0x585   : > { %v1316_v44 = vpop.xlane.xlu1 %1315  ;;  %v1152_v45 = vpop.permute.xlu0 %1151 }
 0x586   : > { %4273 = vrcp.f32 %v1316_v44  ;;  %3861 = vmatpush3.msra.mxu1 %v1152_v45  ;;  %v3735_v44 = vld [vmem:[#allocation13] ss:$0 sm:$0xff] }
 0x587   : > { %3870 = vmatprep.subr.mxu1 %v4910_v1 }
 0x589   : > { %v1320_v48 = vpop.permute.xlu1 %1319  ;;  %v1544_v57 = vpop.permute.xlu0 %1543 }
 0x58c   : > { %v4272_v46 = vpop.eup %4271 }
 0x58d   : > { %v1150_v47 = vmul.f32 %v4272_v46, %v4268_v38  ;;  %v1546_v55 = vpop.permute.xlu1 %1545 }
 0x58f   : > { %3863 = vmatmul.mubr.msk.f32.vlgmr.msra.gmra.mrb[2].mxu1 %vm1063_vm2, %v1150_v47 }
 0x590   : > { %v4274_v49 = vpop.eup %4273  ;;  %3871 = vmatpush3.msra.mxu1 %v1320_v48  ;;  %3872 = vmatprep.mubr.msk.f32.mxu1 %vm4909_vm0, %v4910_v1 }
 0x591   : > { %v1318_v50 = vmul.f32 %v4274_v49, %v4270_v40  ;;  %3880 = vmatprep.subr.mxu1 %v4910_v1 }
 0x593   : > { %3873 = vmatmul.mubr.msk.f32.vlgmr.msra.gmra.mrb[4].mxu1 %vm1063_vm2, %v1318_v50 }
 0x594   : > { %3882 = vmatprep.mubr.msk.f32.mxu1 %vm4909_vm0, %v4910_v1  ;;  %3881 = vmatpush3.msra.mxu1 %v1054_v51 }
 0x595   : > { %3890 = vmatprep.subr.mxu1 %v4910_v1 }
 0x662   : > { %v1223_v52 = vpop.f32.mrb[2].mxu1 }
 0x663   : > { %v3864_v53 = vpop.f32.mrb[3].mxu1  ;;  %3883 = vmatmul.mubr.msk.f32.vlgmr.msra.gmra.mrb[6].mxu1 %vm1063_vm2, %v1223_v52 }
 0x664   : > { %3892 = vmatprep.mubr.msk.f32.mxu1 %vm4909_vm0, %v4910_v1 }
 0x666   : > { %v1391_v54 = vpop.f32.mrb[4].mxu1 }
 0x667   : > { %v3874_v56 = vpop.f32.mrb[5].mxu1  ;;  %3878 = vmatmul.mubr.msk.f32.vlgmr.msra.gmra.mrb[4].mxu0 %vm1063_vm2, %v1391_v54 }
 0x668   : > { %3886 = vmatpush3.xpose.msk.msra.mxu0 %vm1063_vm2, %v1546_v55  ;;  %3887 = vmatprep.mubr.msk.f32.mxu0 %vm4909_vm0, %v4910_v1  ;;  %v2148_v55 = vld [vmem:[#allocation19] sm:$0xff]  ;;  %v2149_v56 = vld [vmem:[#allocation19 + $0x8] sm:$0xff] }
 0x669   : > { %3895 = vmatprep.subr.mxu0 %v4910_v1 }
 0x66b   : > { %3888 = vmatmul.mubr.msk.f32.vlgmr.msra.gmra.mrb[6].mxu0 %vm1063_vm2, %v1544_v57  ;;  %v4032_v57 = vpack.c.bf16 %v2149_v56, %v2148_v55 }
 0x66c   : > { %3897 = vmatprep.mubr.msk.f32.mxu0 %vm4909_vm0, %v4910_v1  ;;  %3896 = vmatpush3.msra.mxu0 %v1056_v22  ;;  %v3738_v22 = vld [vmem:[#allocation17] ss:$0 sm:$0xff] }
 0x66d   : > { %3905 = vmatprep.subr.mxu0 %v4910_v1 }
 0x736   : > { %v1537_v58 = vpop.f32.mrb[6].mxu1 }
 0x737   : > { %v3884_v59 = vpop.f32.mrb[7].mxu1 }
 0x73a   : > { %v1464_v60 = vpop.f32.mrb[4].mxu0 }
 0x73b   : > { %v5628_v61 = vadd.f32 %v1537_v58, %v1464_v60  ;;  %v3879_v62 = vpop.f32.mrb[5].mxu0  ;;  %v2064_v58 = vld [vmem:[%s5992_s12] sm:$0xff] }
 0x73c   : > { %v2150_v60 = vld [vmem:[#allocation19 + $0x10] sm:$0xff] }
 0x73e   : > { %v1617_v2 = vpop.f32.mrb[6].mxu0 }
 0x73f   : > { %v1618_v3 = vadd.f32 %v1617_v2, %v1542_v63  ;;  %v3889_v4 = vpop.f32.mrb[7].mxu0  ;;  %v2066_v63 = vld [vmem:[%s5992_s12 + $0x10] sm:$0xff]  ;;  %v2067_v2 = vld [vmem:[%s5992_s12 + $0x18] sm:$0xff] }
 0x740   : > { %v963_v4 = vld [vmem:[%s834_s2] sm:$0xff]  ;;  %s5993_s2 = smov 104  }
 0x741   : > { %v1621_v5 = vsel %vm1053_vm3, %v1618_v3, -1e+30  ;;  %v4029_v3 = vpack.c.bf16 %v2067_v2, %v2066_v63 }
 0x742   : > { %v1622_v6 = vsel %vm1063_vm2, %v1621_v5, -inf }
 0x743   : > { %1623 = vmax.xlane.f32.xlu1 %v1622_v6 }
 0x754   : > { %1787 = vrot.lane.b32.xlu1 %v5563_v11, %s5919_s4  ;;  %s3428_s4 = scalar_lea.sflag [#allocation4], %s5498_s11 }
 0x758   : > { %1785 = vrot.lane.b32.xlu1 %v5568_v13, %s5921_s8 }
 0x7d0   : > { %v1624_v7 = vpop.xlane.xlu1 %1623 }
 0x7d1   : > { %v1625_v9 = vsub.f32 %v1621_v5, %v1624_v7 }
 0x7d3   : > { %v1626_v10 = vmul.f32 1.442695, %v1625_v9 }
 0x7d4   : > { %v1788_v20 = vpop.permute.xlu1 %1787 }
 0x7d5   : > { %4275 = vpow2.f32 %v1626_v10  ;;  %v3736_v10 = vld [vmem:[#allocation14] ss:$0 sm:$0xff] }
 0x7d8   : > { %v1786_v21 = vpop.permute.xlu1 %1785 }
 0x7df   : > { %v4276_v12 = vpop.eup %4275 }
 0x7e0   : > { %v1628_v14 = vsel %vm1063_vm2, %v4276_v12, 0.0 }
 0x7e1   : > { %1629 = vadd.xlane.f32.xlu0 %v1628_v14  ;;  %v3737_v14 = vld [vmem:[#allocation16] ss:$0 sm:$0xff] }
 0x7f7   : > { %1633 = vrot.lane.b32.xlu0 %v5563_v11, %s4920_s6  ;;  %s6000_s6 = sld [smem:[#allocation62_spill]] }
 0x86e   : > { %v1630_v15 = vpop.xlane.xlu0 %1629 }
 0x86f   : > { %4277 = vrcp.f32 %v1630_v15 }
 0x872   : > { %v1634_v16 = vpop.permute.xlu0 %1633 }
 0x873   : > { %3891 = vmatpush3.msra.mxu1 %v1634_v16 }
 0x874   : > { %3900 = vmatprep.subr.mxu1 %v4910_v1 }
 0x879   : > { %v4278_v17 = vpop.eup %4277 }
 0x87a   : > { %v1632_v13 = vmul.f32 %v4278_v17, %v4276_v12  ;;  %v3740_v17 = vld [vmem:[#allocation20] ss:$0 sm:$0xff] }
 0x87c   : > { %3893 = vmatmul.mubr.msk.f32.vlgmr.msra.gmra.mrb[8].mxu1 %vm1063_vm2, %v1632_v13 }
 0x87d   : > { %3901 = vmatpush3.xpose.msk.msra.mxu1 %vm1063_vm2, %v1788_v20  ;;  %3902 = vmatprep.mubr.msk.f32.mxu1 %vm4909_vm0, %v4910_v1 }
 0x87e   : > { %3910 = vmatprep.subr.mxu1 %v4910_v1 }
 0x880   : > { %3903 = vmatmul.mubr.msk.f32.vlgmr.msra.gmra.mrb[10].mxu1 %vm1063_vm2, %v1786_v21 }
 0x881   : > { %3912 = vmatprep.mubr.msk.f32.mxu1 %vm4909_vm0, %v4910_v1  ;;  %3911 = vmatpush3.msra.mxu1 %v1057_v18 }
 0x882   : > { %4031 = vmatprep.subr.bf16.mxu1 %v4908_v0 }
 0x94f   : > { %v1705_v23 = vpop.f32.mrb[8].mxu1 }
 0x950   : > { %v3894_v24 = vpop.f32.mrb[9].mxu1  ;;  %3898 = vmatmul.mubr.msk.f32.vlgmr.msra.gmra.mrb[8].mxu0 %vm1063_vm2, %v1705_v23 }
 0x951   : > { %3907 = vmatprep.mubr.msk.f32.mxu0 %vm4909_vm0, %v4910_v1 }
 0x953   : > { %v1859_v26 = vpop.f32.mrb[10].mxu1 }
 0x954   : > { %v1860_v27 = vadd.f32 %v1859_v26, %v1784_v25  ;;  %v3904_v28 = vpop.f32.mrb[11].mxu1 }
 0x956   : > { %v1863_v29 = vsel %vm1053_vm3, %v1860_v27, -1e+30 }
 0x957   : > { %v1864_v30 = vsel %vm1063_vm2, %v1863_v29, -inf }
 0x958   : > { %1865 = vmax.xlane.f32.xlu0 %v1864_v30 }
 0x96e   : > { %1875 = vrot.lane.b32.xlu0 %v5563_v11, %s4921_s17  ;;  %s3768_s17 = sshll.u32 %s5975_s7, 7 }
 0x9e5   : > { %v1866_v31 = vpop.xlane.xlu0 %1865 }
 0x9e6   : > { %v1867_v32 = vsub.f32 %v1863_v29, %v1866_v31 }
 0x9e8   : > { %v1868_v33 = vmul.f32 1.442695, %v1867_v32 }
 0x9e9   : > { %v1876_v34 = vpop.permute.xlu0 %1875 }
 0x9ea   : > { %4279 = vpow2.f32 %v1868_v33  ;;  %3906 = vmatpush3.msra.mxu0 %v1876_v34 }
 0x9eb   : > { %4025 = vmatprep.subr.bf16.mxu0 %v4908_v0 }
 0x9f4   : > { %v4280_v35 = vpop.eup %4279 }
 0x9f5   : > { %v1870_v36 = vsel %vm1063_vm2, %v4280_v35, 0.0 }
 0x9f6   : > { %1871 = vadd.xlane.f32.xlu1 %v1870_v36 }
 0xa23   : > { %v1778_v19 = vpop.f32.mrb[8].mxu0 }
 0xa24   : > { %v1782_v37 = vadd.f32 %v1778_v19, %v5628_v61  ;;  %v3899_v11 = vpop.f32.mrb[9].mxu0  ;;  %v2151_v61 = vld [vmem:[#allocation19 + $0x18] sm:$0xff] }
 0xa25   : > { %v4035_v62 = vpack.c.bf16 %v2151_v61, %v2150_v60 }
 0xa83   : > { %v1872_v38 = vpop.xlane.xlu1 %1871 }
 0xa84   : > { %4281 = vrcp.f32 %v1872_v38 }
 0xa8e   : > { %v4282_v39 = vpop.eup %4281 }
 0xa8f   : > { %v1874_v40 = vmul.f32 %v4282_v39, %v4280_v35 }
 0xa91   : > { %3908 = vmatmul.mubr.msk.f32.vlgmr.msra.gmra.mrb[10].mxu0 %vm1063_vm2, %v1874_v40 }
 0xa92   : > { %3923 = vmatprep.mubr.msk.f32.mxu0 %vm4909_vm0, %v4910_v1 }
 0xb64   : > { %v1947_v41 = vpop.f32.mrb[10].mxu0 }
 0xb65   : > { %v3909_v42 = vpop.f32.mrb[11].mxu0  ;;  %3913 = vmatmul.mubr.msk.f32.vlgmr.msra.gmra.mrb[12].mxu1 %vm1063_vm2, %v1947_v41 }
 0xb66   : > { %3934 = vmatprep.mubr.msk.f32.mxu1 %vm4909_vm0, %v4910_v1  ;;  %4033 = vmatpush3.bf16.msra.mxu1 %v4032_v57 }
 0xb67   : > { %4034 = vmatprep.subr.bf16.mxu1 %v4908_v0 }
 0xb6a   : > { %4036 = vmatpush3.bf16.msra.mxu1 %v4035_v62 }
 0xb6b   : > { %3942 = vmatprep.subr.mxu1 %v4910_v1 }
 0xb6d   : > { %3935 = vmatmul.mubr.msk.f32.vlgmr.msra.gmra.mrb[14].mxu1 %vm975_vm1, %v963_v4 }
 0xb6e   : > { %3944 = vmatprep.mubr.msk.f32.mxu1 %vm4909_vm0, %v4910_v1 }
 0xc38   : > { %v2020_v43 = vpop.f32.mrb[12].mxu1 }
 0xc39   : > { %v2024_v45 = vadd.f32 %v2020_v43, %v1782_v37  ;;  %v3914_v46 = vpop.f32.mrb[13].mxu1 }
 0xc3b   : > { %v2032_v47 = vadd.f32 %v3735_v44, %v2024_v45 }
 0xc3d   : > { %v2033_v48 = vadd.f32 %v2032_v47, %v5556_v8  ;;  %v2065_v8 = vld [vmem:[%s5992_s12 + $0x8] sm:$0xff] }
 0xc3e   : > { %v4026_v59 = vpack.c.bf16 %v2065_v8, %v2064_v58 }
 0xc3f   : > { %v2034_v49 = vsel %vm975_vm1, %v2033_v48, 0.0 }
 0xc40   : > { %2035 = vadd.xlane.f32.xlu1 %v2034_v49  ;;  %4027 = vmatpush3.bf16.msra.mxu0 %v4026_v59  ;;  %v2228_v20 = vpop.f32.mrb[14].mxu1 }
 0xc41   : > { %4028 = vmatprep.subr.bf16.mxu0 %v4908_v0  ;;  %v5698_v13 = vadd.f32 %v3740_v17, %v2228_v20  ;;  %v3936_v21 = vpop.f32.mrb[15].mxu1  ;;  %v2234_v20 = vld [vmem:[#allocation22 + $0x10] sm:$0xff] }
 0xc44   : > { %4030 = vmatpush3.bf16.msra.mxu0 %v4029_v3 }
 0xc45   : > { %3937 = vmatprep.subr.mxu0 %v4910_v1 }
 0xccd   : > { %v2036_v50 = vpop.xlane.xlu1 %2035 }
 0xcce   : > { %v2038_v51 = vmul.f32 0.03125, %v2036_v50  ;;  %v2232_v50 = vld [vmem:[#allocation22] sm:$0xff] }
 0xcd0   : > { %v2039_v52 = vsub.f32 %v2033_v48, %v2038_v51  ;;  %v2233_v51 = vld [vmem:[#allocation22 + $0x8] sm:$0xff] }
 0xcd2   : > { %v2040_v53 = vmul.f32 %v2039_v52, %v2039_v52 }
 0xcd4   : > { %v2041_v54 = vsel %vm975_vm1, %v2040_v53, 0.0 }
 0xcd5   : > { %2042 = vadd.xlane.f32.xlu1 %v2041_v54 }
 0xce6   : > { %2402 = vrot.lane.b32.xlu1 %v5698_v13, %s4912_s10 }
 0xd62   : > { %v2043_v5 = vpop.xlane.xlu1 %2042 }
 0xd63   : > { %v2044_v6 = vmul.f32 0.03125, %v2043_v5 }
 0xd65   : > { %v2045_v7 = vadd.f32 1e-05, %v2044_v6 }
 0xd66   : > { %v2403_v27 = vpop.permute.xlu1 %2402 }
 0xd67   : > { %4283 = vrsqrt.f32 %v2045_v7 }
 0xd71   : > { %v4284_v9 = vpop.eup %4283 }
 0xd72   : > { %v2047_v12 = vmul.f32 %v4284_v9, %v2039_v52 }
 0xd74   : > { %v2055_v15 = vmul.f32 %v3736_v10, %v2047_v12 }
 0xd76   : > { %v5692_v16 = vadd.f32 %v3737_v14, %v2055_v15 }
 0xd78   : > { %3924 = vmatmul.mubr.msk.f32.vlgmr.msra.gmra.mrb[12].mxu0 %vm975_vm1, %v5692_v16 }
 0xd79   : > { %3939 = vmatprep.mubr.msk.f32.mxu0 %vm4909_vm0, %v4910_v1  ;;  %3938 = vmatpush3.xpose.msk.msra.mxu0 %vm1063_vm2, %v5698_v13 }
 0xd7a   : > { %3947 = vmatprep.subr.mxu0 %v4910_v1 }
 0xe4b   : > { %v2144_v23 = vpop.f32.mrb[12].mxu0 }
 0xe4c   : > { %v2145_v24 = vadd.f32 %v3738_v22, %v2144_v23  ;;  %v3925_v25 = vpop.f32.mrb[13].mxu0 }
 0xe4e   : > { %v5705_v26 = vmul.f32 0.35355338, %v2145_v24 }
 0xe50   : > { %2400 = vrot.lane.b32.xlu0 %v5705_v26, %s4912_s10  ;;  %3940 = vmatmul.mubr.msk.f32.vlgmr.msra.gmra.mrb[14].mxu0 %vm1063_vm2, %v5705_v26  ;;  %s5995_s10 = smov 72  }
 0xe51   : > { %3948 = vmatpush3.xpose.msk.msra.mxu0 %vm1063_vm2, %v2403_v27  ;;  %3949 = vmatprep.mubr.msk.f32.mxu0 %vm4909_vm0, %v4910_v1 }
 0xe52   : > { %3957 = vmatprep.subr.mxu0 %v4910_v1 }
 0xec2   : > { %v2401_v28 = vpop.permute.xlu0 %2400 }
 0xec3   : > { %3950 = vmatmul.mubr.msk.f32.vlgmr.msra.gmra.mrb[16].mxu0 %vm1063_vm2, %v2401_v28 }
 0xec4   : > { %3959 = vmatprep.mubr.msk.f32.mxu0 %vm4909_vm0, %v4910_v1  ;;  %3958 = vmatpush3.msra.mxu0 %v2233_v51 }
 0xec5   : > { %3967 = vmatprep.subr.mxu0 %v4910_v1 }
 0xf23   : > { %v2309_v29 = vpop.f32.mrb[14].mxu0 }
 0xf24   : > { %v3941_v30 = vpop.f32.mrb[15].mxu0  ;;  %v2313_v31 = vsel %vm1063_vm2, %v2309_v29, -inf }
 0xf25   : > { %2314 = vmax.xlane.f32.xlu0 %v2313_v31 }
 0xf96   : > { %v2474_v32 = vpop.f32.mrb[16].mxu0 }
 0xf97   : > { %v3951_v33 = vpop.f32.mrb[17].mxu0  ;;  %v2478_v34 = vsel %vm1063_vm2, %v2474_v32, -inf }
 0xf98   : > { %2479 = vmax.xlane.f32.xlu1 %v2478_v34 }
 0xfa9   : > { %2489 = vrot.lane.b32.xlu1 %v5698_v13, %s4913_s20 }
 0xfad   : > { %2713 = vrot.lane.b32.xlu1 %v5698_v13, %s4917_s1 }
 0xfb2   : > { %v2315_v35 = vpop.xlane.xlu0 %2314 }
 0xfb3   : > { %v2316_v36 = vsub.f32 %v2309_v29, %v2315_v35 }
 0xfb5   : > { %v2317_v18 = vmul.f32 1.442695, %v2316_v36 }
 0xfb7   : > { %4285 = vpow2.f32 %v2317_v18 }
 0xfc1   : > { %v4286_v19 = vpop.eup %4285 }
 0xfc2   : > { %v2319_v37 = vsel %vm1063_vm2, %v4286_v19, 0.0 }
 0xfc3   : > { %2320 = vadd.xlane.f32.xlu0 %v2319_v37 }
0x1025   : > { %v2480_v11 = vpop.xlane.xlu1 %2479 }
0x1026   : > { %v2481_v38 = vsub.f32 %v2474_v32, %v2480_v11  ;;  %v2235_v32 = vld [vmem:[#allocation22 + $0x18] sm:$0xff] }
0x1028   : > { %v2482_v39 = vmul.f32 1.442695, %v2481_v38  ;;  %v3758_v38 = vld [vmem:[#allocation23] ss:$0 sm:$0xff] }
0x1029   : > { %v2490_v47 = vpop.permute.xlu1 %2489 }
0x102a   : > { %4287 = vpow2.f32 %v2482_v39 }
0x102d   : > { %v2714_v55 = vpop.permute.xlu1 %2713 }
0x1034   : > { %v4288_v40 = vpop.eup %4287 }
0x1035   : > { %v2484_v41 = vsel %vm1063_vm2, %v4288_v40, 0.0 }
0x1036   : > { %2485 = vadd.xlane.f32.xlu0 %v2484_v41 }
0x104c   : > { %2324 = vrot.lane.b32.xlu0 %v5698_v13, %s4911_s21  ;;  %s5994_s21 = smov 80  }
0x1050   : > { %2711 = vrot.lane.b32.xlu0 %v5705_v26, %s4917_s1  ;;  %v2321_v42 = vpop.xlane.xlu0 %2320  ;;  %s5996_s1 = sld [smem:[#allocation58_spill]] }
0x1051   : > { %4289 = vrcp.f32 %v2321_v42 }
0x1056   : > { %v3230_v51 = vld [vmem:[%s5996_s1 + $0x18] sm:$0xff] }
0x105b   : > { %v4290_v44 = vpop.eup %4289 }
0x105c   : > { %v2323_v45 = vmul.f32 %v4290_v44, %v4286_v19 }
0x10c3   : > { %v2486_v43 = vpop.xlane.xlu0 %2485 }
0x10c4   : > { %4291 = vrcp.f32 %v2486_v43 }
0x10c7   : > { %v2325_v46 = vpop.permute.xlu0 %2324 }
0x10c8   : > { %3943 = vmatpush3.msra.mxu1 %v2325_v46 }
0x10c9   : > { %3945 = vmatmul.mubr.msk.f32.vlgmr.msra.gmra.mrb[16].mxu1 %vm1063_vm2, %v2323_v45  ;;  %3952 = vmatprep.subr.mxu1 %v4910_v1 }
0x10ca   : > { %3953 = vmatpush3.msra.mxu1 %v2490_v47  ;;  %3954 = vmatprep.mubr.msk.f32.mxu1 %vm4909_vm0, %v4910_v1 }
0x10cb   : > { %3962 = vmatprep.subr.mxu1 %v4910_v1  ;;  %v2712_v57 = vpop.permute.xlu0 %2711 }
0x10ce   : > { %v4292_v48 = vpop.eup %4291 }
0x10cf   : > { %v2488_v49 = vmul.f32 %v4292_v48, %v4288_v40 }
0x10d1   : > { %3955 = vmatmul.mubr.msk.f32.vlgmr.msra.gmra.mrb[18].mxu1 %vm1063_vm2, %v2488_v49  ;;  %v3228_v49 = vld [vmem:[%s5996_s1 + $0x8] sm:$0xff] }
0x10d2   : > { %3964 = vmatprep.mubr.msk.f32.mxu1 %vm4909_vm0, %v4910_v1  ;;  %3963 = vmatpush3.msra.mxu1 %v2232_v50 }
0x10d3   : > { %3972 = vmatprep.subr.mxu1 %v4910_v1 }
0x119c   : > { %v2396_v52 = vpop.f32.mrb[16].mxu1 }
0x119d   : > { %v3946_v53 = vpop.f32.mrb[17].mxu1  ;;  %3965 = vmatmul.mubr.msk.f32.vlgmr.msra.gmra.mrb[20].mxu1 %vm1063_vm2, %v2396_v52 }
0x119e   : > { %3974 = vmatprep.mubr.msk.f32.mxu1 %vm4909_vm0, %v4910_v1  ;;  %v3312_v53 = vld [vmem:[#allocation28] sm:$0xff] }
0x11a4   : > { %v2561_v54 = vpop.f32.mrb[18].mxu1 }
0x11a5   : > { %v3956_v56 = vpop.f32.mrb[19].mxu1  ;;  %3960 = vmatmul.mubr.msk.f32.vlgmr.msra.gmra.mrb[18].mxu0 %vm1063_vm2, %v2561_v54  ;;  %v3313_v54 = vld [vmem:[#allocation28 + $0x8] sm:$0xff] }
0x11a6   : > { %3968 = vmatpush3.xpose.msk.msra.mxu0 %vm1063_vm2, %v2714_v55  ;;  %3969 = vmatprep.mubr.msk.f32.mxu0 %vm4909_vm0, %v4910_v1  ;;  %v4044_v55 = vpack.c.bf16 %v3313_v54, %v3312_v53 }
0x11a7   : > { %3977 = vmatprep.subr.mxu0 %v4910_v1 }
0x11a9   : > { %3970 = vmatmul.mubr.msk.f32.vlgmr.msra.gmra.mrb[20].mxu0 %vm1063_vm2, %v2712_v57 }
0x11aa   : > { %3979 = vmatprep.mubr.msk.f32.mxu0 %vm4909_vm0, %v4910_v1  ;;  %3978 = vmatpush3.msra.mxu0 %v2234_v20 }
0x11ab   : > { %3987 = vmatprep.subr.mxu0 %v4910_v1 }
0x1270   : > { %v2707_v58 = vpop.f32.mrb[20].mxu1 }
0x1271   : > { %v3966_v8 = vpop.f32.mrb[21].mxu1 }
0x1278   : > { %v2634_v59 = vpop.f32.mrb[18].mxu0 }
0x1279   : > { %v2708_v60 = vadd.f32 %v2707_v58, %v2634_v59  ;;  %v3961_v61 = vpop.f32.mrb[19].mxu0  ;;  %v3759_v59 = vld [vmem:[#allocation25] ss:$0 sm:$0xff] }
0x127a   : > { %v3760_v61 = vld [vmem:[#allocation26] ss:$0 sm:$0xff] }
0x127c   : > { %v2785_v62 = vpop.f32.mrb[20].mxu0 }
0x127d   : > { %v3971_v63 = vpop.f32.mrb[21].mxu0  ;;  %v2789_v2 = vsel %vm1063_vm2, %v2785_v62, -inf }
0x127e   : > { %2790 = vmax.xlane.f32.xlu1 %v2789_v2  ;;  %v3314_v2 = vld [vmem:[#allocation28 + $0x10] sm:$0xff] }
0x128f   : > { %2952 = vrot.lane.b32.xlu1 %v5698_v13, %s5993_s2 }
0x1293   : > { %2950 = vrot.lane.b32.xlu1 %v5705_v26, %s5993_s2  ;;  %s961_s2 = scalar_lea.vmem [#allocation29], %s5501_s26  ;;  %s4922_s26 = smov [#allocation29]  }
0x1294   : > { %s4789_s7 = sshll.u32 %s4922_s26, 4  ;;  %s4790_s7 = int_to_ptr.vmem [resolvable:$false] %s4789_s7 }
0x130b   : > { %v2791_v3 = vpop.xlane.xlu1 %2790 }
0x130c   : > { %v2792_v4 = vsub.f32 %v2785_v62, %v2791_v3  ;;  %v3315_v3 = vld [vmem:[#allocation28 + $0x18] sm:$0xff] }
0x130e   : > { %v2793_v5 = vmul.f32 1.442695, %v2792_v4  ;;  %v4047_v4 = vpack.c.bf16 %v3315_v3, %v3314_v2 }
0x130f   : > { %v2953_v14 = vpop.permute.xlu1 %2952 }
0x1310   : > { %4293 = vpow2.f32 %v2793_v5 }
0x1313   : > { %v2951_v17 = vpop.permute.xlu1 %2950 }
0x131a   : > { %v4294_v6 = vpop.eup %4293 }
0x131b   : > { %v2795_v7 = vsel %vm1063_vm2, %v4294_v6, 0.0 }
0x131c   : > { %2796 = vadd.xlane.f32.xlu0 %v2795_v7 }
0x1332   : > { %2800 = vrot.lane.b32.xlu0 %v5698_v13, %s5994_s21  ;;  %s5997_s21 = sld [smem:[#allocation59_spill]] }
0x13a9   : > { %v2797_v9 = vpop.xlane.xlu0 %2796 }
0x13aa   : > { %4295 = vrcp.f32 %v2797_v9 }
0x13ad   : > { %v2801_v10 = vpop.permute.xlu0 %2800 }
0x13ae   : > { %3973 = vmatpush3.msra.mxu1 %v2801_v10  ;;  %v3763_v10 = vld [vmem:[%s5998_s18] ss:$0 sm:$0xff]  ;;  %s6001_s18 = sld [smem:[#allocation63_spill]] }
0x13af   : > { %3982 = vmatprep.subr.mxu1 %v4910_v1 }
0x13b4   : > { %v4296_v12 = vpop.eup %4295 }
0x13b5   : > { %v2799_v15 = vmul.f32 %v4296_v12, %v4294_v6 }
0x13b7   : > { %3975 = vmatmul.mubr.msk.f32.vlgmr.msra.gmra.mrb[22].mxu1 %vm1063_vm2, %v2799_v15 }
0x13b8   : > { %3983 = vmatpush3.xpose.msk.msra.mxu1 %vm1063_vm2, %v2953_v14  ;;  %3984 = vmatprep.mubr.msk.f32.mxu1 %vm4909_vm0, %v4910_v1 }
0x13b9   : > { %3992 = vmatprep.subr.mxu1 %v4910_v1 }
0x13bb   : > { %3985 = vmatmul.mubr.msk.f32.vlgmr.msra.gmra.mrb[24].mxu1 %vm1063_vm2, %v2951_v17 }
0x13bc   : > { %3994 = vmatprep.mubr.msk.f32.mxu1 %vm4909_vm0, %v4910_v1  ;;  %3993 = vmatpush3.msra.mxu1 %v2235_v32  ;;  %v3766_v32 = vld [vmem:[%s6000_s6] ss:$0 sm:$0xff] }
0x13bd   : > { %4043 = vmatprep.subr.bf16.mxu1 %v4908_v0 }
0x148a   : > { %v2872_v21 = vpop.f32.mrb[22].mxu1 }
0x148b   : > { %v3976_v22 = vpop.f32.mrb[23].mxu1  ;;  %3980 = vmatmul.mubr.msk.f32.vlgmr.msra.gmra.mrb[22].mxu0 %vm1063_vm2, %v2872_v21 }
0x148c   : > { %3989 = vmatprep.mubr.msk.f32.mxu0 %vm4909_vm0, %v4910_v1 }
0x148e   : > { %v3024_v23 = vpop.f32.mrb[24].mxu1 }
0x148f   : > { %v3986_v24 = vpop.f32.mrb[25].mxu1  ;;  %v3028_v25 = vsel %vm1063_vm2, %v3024_v23, -inf }
0x1490   : > { %3029 = vmax.xlane.f32.xlu0 %v3028_v25 }
0x14a6   : > { %3039 = vrot.lane.b32.xlu0 %v5698_v13, %s5995_s10 }
0x151d   : > { %v3030_v26 = vpop.xlane.xlu0 %3029 }
0x151e   : > { %v3031_v27 = vsub.f32 %v3024_v23, %v3030_v26 }
0x1520   : > { %v3032_v28 = vmul.f32 1.442695, %v3031_v27 }
0x1521   : > { %v3040_v29 = vpop.permute.xlu0 %3039 }
0x1522   : > { %4297 = vpow2.f32 %v3032_v28  ;;  %3988 = vmatpush3.msra.mxu0 %v3040_v29 }
0x1523   : > { %4037 = vmatprep.subr.bf16.mxu0 %v4908_v0 }
0x152c   : > { %v4298_v30 = vpop.eup %4297 }
0x152d   : > { %v3034_v31 = vsel %vm1063_vm2, %v4298_v30, 0.0 }
0x152e   : > { %3035 = vadd.xlane.f32.xlu1 %v3034_v31 }
0x155e   : > { %v2945_v33 = vpop.f32.mrb[22].mxu0 }
0x155f   : > { %v2949_v34 = vadd.f32 %v2945_v33, %v2708_v60  ;;  %v3981_v35 = vpop.f32.mrb[23].mxu0 }
0x15bb   : > { %v3036_v13 = vpop.xlane.xlu1 %3035 }
0x15bc   : > { %4299 = vrcp.f32 %v3036_v13 }
0x15c6   : > { %v4300_v36 = vpop.eup %4299 }
0x15c7   : > { %v3038_v18 = vmul.f32 %v4300_v36, %v4298_v30  ;;  %v3765_v30 = vld [vmem:[%s5999_s22] ss:$0 sm:$0xff]  ;;  %s4791_s22 = scalar_lea.vmem %s4790_s7, 256 }
0x15c9   : > { %3990 = vmatmul.mubr.msk.f32.vlgmr.msra.gmra.mrb[24].mxu0 %vm1063_vm2, %v3038_v18 }
0x15ca   : > { %4005 = vmatprep.mubr.msk.f32.mxu0 %vm4909_vm0, %v4910_v1 }
0x169c   : > { %v3111_v19 = vpop.f32.mrb[24].mxu0 }
0x169d   : > { %v3991_v37 = vpop.f32.mrb[25].mxu0  ;;  %3995 = vmatmul.mubr.msk.f32.vlgmr.msra.gmra.mrb[26].mxu1 %vm1063_vm2, %v3111_v19 }
0x169e   : > { %4016 = vmatprep.mubr.msk.f32.mxu1 %vm4909_vm0, %v4910_v1  ;;  %v3227_v1 = vld [vmem:[%s5996_s1] sm:$0xff]  ;;  %4045 = vmatpush3.bf16.msra.mxu1 %v4044_v55 }
0x169f   : > { %v4038_v50 = vpack.c.bf16 %v3228_v49, %v3227_v1  ;;  %4046 = vmatprep.subr.bf16.mxu1 %v4908_v0 }
0x16a1   : > { %4039 = vmatpush3.bf16.msra.mxu0 %v4038_v50 }
0x16a2   : > { %4040 = vmatprep.subr.bf16.mxu0 %v4908_v0  ;;  %4048 = vmatpush3.bf16.msra.mxu1 %v4047_v4  ;;  %v3761_v0 = vld [vmem:[%s5997_s21] ss:$0 sm:$0xff]  ;;  %s3441_s21 = sshll.u32 %s961_s2, 4  ;;  %s5824_s21 = int_to_ptr.vmem [resolvable:$true] %s3441_s21 }
0x16a3   : > { %s4785_s8 = scalar_lea.vmem %s5824_s21, 128  ;;  %p4792_p3 = scmp.lt.s32.totalorder %s5824_s21, %s4790_s7 }
0x16a4   : > { %p4786_p4 = scmp.ne.s32.totalorder %s5824_s21, %s4785_s8  ;;  %p4793_p2 = scmp.lt.s32.totalorder %s4791_s22, %s4785_s8 }
0x16a6   : > { %p4787_p13 = pnand %p4786_p4, %p6002_p12  ;;  %p4794_p6 = por %p4793_p2, %p4792_p3 }
0x16a8   : > { %p4788_p1 = pneg %p4787_p13 }
0x16aa   : > { %p4795_p10 = pnand %p4794_p6, %p4788_p1 }
0x1770   : > { %v3184_v11 = vpop.f32.mrb[26].mxu1 }
0x1771   : > { %v3188_v39 = vadd.f32 %v3184_v11, %v2949_v34  ;;  %v3996_v40 = vpop.f32.mrb[27].mxu1 }
0x1773   : > { %v3196_v41 = vadd.f32 %v3758_v38, %v3188_v39 }
0x1775   : > { %v3197_v42 = vadd.f32 %v3196_v41, %v5692_v16  ;;  %v3229_v16 = vld [vmem:[%s5996_s1 + $0x10] sm:$0xff]  ;;  %s5822_s1 = scalar_lea.hbm %s6001_s18, %s3768_s17 }
0x1776   : > { %v4041_v52 = vpack.c.bf16 %v3230_v51, %v3229_v16 }
0x1777   : > { %v3198_v43 = vsel %vm975_vm1, %v3197_v42, 0.0 }
0x1778   : > { %3199 = vadd.xlane.f32.xlu1 %v3198_v43  ;;  %4042 = vmatpush3.bf16.msra.mxu0 %v4041_v52 }
0x1805   : > { %v3200_v44 = vpop.xlane.xlu1 %3199 }
0x1806   : > { %v3201_v45 = vmul.f32 0.03125, %v3200_v44 }
0x1808   : > { %v3202_v46 = vsub.f32 %v3197_v42, %v3201_v45 }
0x180a   : > { %v3203_v47 = vmul.f32 %v3202_v46, %v3202_v46 }
0x180c   : > { %v3204_v48 = vsel %vm975_vm1, %v3203_v47, 0.0 }
0x180d   : > { %3205 = vadd.xlane.f32.xlu1 %v3204_v48 }
0x189a   : > { %v3206_v56 = vpop.xlane.xlu1 %3205 }
0x189b   : > { %v3207_v57 = vmul.f32 0.03125, %v3206_v56 }
0x189d   : > { %v3208_v58 = vadd.f32 1e-05, %v3207_v57 }
0x189f   : > { %4301 = vrsqrt.f32 %v3208_v58 }
0x18a9   : > { %v4302_v8 = vpop.eup %4301 }
0x18aa   : > { %v3210_v60 = vmul.f32 %v4302_v8, %v3202_v46 }
0x18ac   : > { %v3218_v62 = vmul.f32 %v3759_v59, %v3210_v60 }
0x18ae   : > { %v3226_v63 = vadd.f32 %v3760_v61, %v3218_v62 }
0x18b0   : > { %4006 = vmatmul.mubr.msk.f32.vlgmr.msra.gmra.mrb[26].mxu0 %vm975_vm1, %v3226_v63 }
0x1983   : > { %v3307_v5 = vpop.f32.mrb[26].mxu0 }
0x1984   : > { %v3308_v6 = vadd.f32 %v3761_v0, %v3307_v5  ;;  %v4007_v7 = vpop.f32.mrb[27].mxu0 }
0x1986   : > { %v3311_v9 = vmax.f32 %v3308_v6, 0.0 }
0x1988   : > { %4017 = vmatmul.mubr.msk.f32.vlgmr.msra.gmra.mrb[28].mxu1 %vm975_vm1, %v3311_v9 }
0x1a5b   : > { %v3392_v12 = vpop.f32.mrb[28].mxu1 }
0x1a5c   : > { %v3393_v14 = vadd.f32 %v3763_v10, %v3392_v12  ;;  %v4018_v15 = vpop.f32.mrb[29].mxu1 }
0x1a5e   : > { %v3396_v17 = vadd.f32 %v3393_v14, %v3226_v63 }
0x1a60   : > { %v3397_v20 = vsel %vm975_vm1, %v3396_v17, 0.0 }
0x1a61   : > { %3398 = vadd.xlane.f32.xlu1 %v3397_v20 }
0x1aee   : > { %v3399_v21 = vpop.xlane.xlu1 %3398 }
0x1aef   : > { %v3400_v22 = vmul.f32 0.03125, %v3399_v21 }
0x1af1   : > { %v3401_v23 = vsub.f32 %v3396_v17, %v3400_v22 }
0x1af3   : > { %v3402_v24 = vmul.f32 %v3401_v23, %v3401_v23 }
0x1af5   : > { %v3403_v25 = vsel %vm975_vm1, %v3402_v24, 0.0 }
0x1af6   : > { %3404 = vadd.xlane.f32.xlu1 %v3403_v25 }
0x1b83   : > { %v3405_v26 = vpop.xlane.xlu1 %3404 }
0x1b84   : > { %v3406_v27 = vmul.f32 0.03125, %v3405_v26 }
0x1b86   : > { %v3407_v28 = vadd.f32 1e-05, %v3406_v27 }
0x1b88   : > { %4303 = vrsqrt.f32 %v3407_v28 }
0x1b92   : > { %v4304_v29 = vpop.eup %4303 }
0x1b93   : > { %v3409_v31 = vmul.f32 %v4304_v29, %v3401_v23 }
0x1b95   : > { %v3417_v33 = vmul.f32 %v3765_v30, %v3409_v31 }
0x1b97   : > { %v3425_v34 = vadd.f32 %v3766_v32, %v3417_v33 }
0x1b99   : > { %3426 = vst.msk [vmem:[%s961_s2] sm:$0xff] %vm975_vm1, %v3425_v34 }
0x1b9a   : > { %4798 = shalt.err (!%p4795_p10)
}
0x1b9b   : > { %s4799_s11 = scalar_lea.hbm %s5822_s1, 128  ;;  %s4803_s6 = scalar_lea.hbm %s6001_s18, 256 }
0x1b9c   : > { %p4800_p5 = scmp.ne.s32.totalorder %s5822_s1, %s4799_s11  ;;  %p4804_p7 = scmp.lt.u32.totalorder %s5822_s1, %s6001_s18 }
0x1b9d   : > { %p4805_p11 = scmp.lt.u32.totalorder %s4803_s6, %s4799_s11  ;;  %p4807_p4 = scmp.lt.u32.totalorder %s4799_s11, %s5822_s1 }
0x1b9e   : > { %p4801_p9 = pnand %p4800_p5, %p6002_p12 }
0x1b9f   : > { %p4806_p8 = por %p4805_p11, %p4804_p7 }
0x1ba0   : > { %p4802_p0 = pneg %p4801_p9 }
0x1ba1   : > { %p4808_p13 = por %p4807_p4, %p4806_p8 }
0x1ba3   : > { %p4809_p1 = pnand %p4808_p13, %p4802_p0 }
0x1ba5   : > { %4812 = shalt.err (!%p4809_p1)
}
0x1ba6   : > { %4113 = dma.vmem_to_hbm [thread:$0]  (%p6002_p12), %s5824_s21, 128, %s5822_s1, %s3428_s4  }
0x1ba7 PF: > { %s6003_s10 = sld [smem:[#allocation41_spill]]  ;;  %p6004_p3 = scmp.ne.s32.totalorder %s5968_s27, 0 }
0x1ba8   : > { %p6005_p2 = scmp.ge.s32.totalorder %s4887_s25, 2 }
0x1baa   : > { %p4169_p6 = pnand %p6005_p2, %p6004_p3 }
0x1bad   : > { %s3453_s20 = sand.u32 1, %s6003_s10  }
0x1bae   : > { %s3454_s8 = scalar_lea.sflag [#allocation4], %s3453_s20 }
0x1baf   : > { %4870 = dma.done.wait (!%p4169_p6), %s3454_s8, 128  }
0x1bb0   : > { %4872 = vsyncadd (!%p4169_p6), %s3454_s8, 4294967168  ;;  %p46_p10 = scmp.ge.s32.totalorder %s5399_s5, 4   ;;  %s6006_s4 = smov %s4879_s30 }
0x1bb1   : > { %s6007_s30 = smov %s4883_s24  ;;  %s6008_s24 = smov %s5411_s29 }
0x1bb2   : > { %s6009_s25 = smov %s5399_s5  ;;  %48 = sbr.rel (!%p46_p10) target bundleno = 35 (0x23), region = 233 }
0x1bb9   :  { %3459 = vsyncpa [#allocation3], 1 }
0x1bba   :  { %3461 = vsyncpa [#allocation3 + $0x1], 1 }
0x1bbb   :  { %3462 = vsyncpa [#allocation6], 1 }
0x1bbc   :  { %3464 = vsyncpa [#allocation6 + $0x1], 1 }
0x1bbd   :  { %3465 = vsyncpa [#allocation9], 1 }
0x1bbe   :  { %3466 = vsyncpa [#allocation12], 1 }
0x1bbf   :  { %3467 = vsyncpa [#allocation15], 1 }
0x1bc0   :  { %3468 = vsyncpa [#allocation18], 1 }
0x1bc1   :  { %3469 = vsyncpa [#allocation21], 1 }
0x1bc2   :  { %3470 = vsyncpa [#allocation24], 1 }
0x1bc3   :  { %3471 = vsyncpa [#allocation27], 1 }
0x1bc4   :  { %3472 = vsyncpa [#allocation4], 1 }
0x1bc5   :  { %3474 = vsyncpa [#allocation4 + $0x1], 1 }

</bundles_post_ra>
